<compile_context>
chip_gen: v6e
topology: v6e:2x2x1
jax: 0.10.0
libtpu: 0.0.40
codegen_flags: <defaults>
</compile_context>

<pallas_src>
import functools

import numpy as np

import jax
import jax.numpy as jnp
from jax.experimental import pallas as pl
from jax.experimental.pallas import tpu as pltpu

NEG_SLOPE = 0.01  # F.leaky_relu default negative_slope


# ------------------------------ Pallas kernel -------------------------------

def _actor_fused_kernel(x_ref, w1_ref, b1_ref, w2_ref, b2_ref, w3_ref, b3_ref,
                        wf1_ref, bf1_ref, wf2_ref, bf2_ref, wf3_ref, bf3_ref,
                        g_ref, o_ref):
    def lrelu(v):
        return jnp.where(v >= 0, v, NEG_SLOPE * v)

    def dense(h, w_ref, b_ref):
        # bf16 operands on the MXU, f32 accumulation, f32 bias add.
        return jnp.dot(h.astype(w_ref.dtype), w_ref[...],
                       preferred_element_type=jnp.float32) + b_ref[...]

    h = lrelu(dense(x_ref[...], w1_ref, b1_ref))   # conv1 as unrolled matmul: (TB, 1024)
    h = lrelu(dense(h, w2_ref, b2_ref))            # conv2:                    (TB, 512)
    h = lrelu(dense(h, w3_ref, b3_ref))            # conv3:                    (TB, 256)
    h = lrelu(dense(h, wf1_ref, bf1_ref))          # fc1:                      (TB, 256) f32

    # fc2 (hidden -> 1): VPU multiply + lane (XLU) reduction — no width-1 matmul.
    s = lrelu(jnp.sum(h * wf2_ref[...], axis=-1, keepdims=True) + bf2_ref[...])  # (TB, 1)

    # fc3 (1 -> A*C) as a VPU broadcast; logits kept lane-flat (TB, A*C).
    logits = s * wf3_ref[...] + bf3_ref[...]

    # Numerically-stable per-finger softmax, fully lane-flat:
    #  - subtracting the row-global max is valid (softmax is shift-invariant
    #    within every C-wide group),
    #  - per-group denominators come from a tiny block-diagonal ones matmul,
    #  - the divide becomes an EUP reciprocal + VPU multiply.
    m = jnp.max(logits, axis=-1, keepdims=True)
    e = jnp.exp(logits - m)
    denom = jnp.dot(e, g_ref[...], preferred_element_type=jnp.float32)   # (TB, A*C)
    o_ref[...] = (e * pl.reciprocal(denom, approx=True)).astype(o_ref.dtype)


@functools.partial(jax.jit, static_argnames=("n_actions", "n_choices", "block_b"))
def actor_forward(prepped, state, n_actions, n_choices, block_b=128):
    """Batched 4-D NCHW forward pass; the whole network runs in one pallas_call."""
    # TODO(synk): single-sample 3-D branch of the PyTorch module (debug print +
    # extra leaky_relu on fc3) is not implemented.
    assert state.ndim == 4 and state.shape[1] == 1
    B = state.shape[0]
    # NCHW flatten; C_in == 1 so this equals channels-last (h, w, c) order.
    # Activations travel as bf16; accumulation inside the kernel is f32.
    x = state.reshape(B, -1).astype(jnp.bfloat16)
    flat_in = x.shape[1]
    AC = n_actions * n_choices

    # Batch tiling: one VMEM-resident weight set, batch tiles streamed over it.
    if B <= block_b:
        tb, b_pad = B, B
    else:
        tb = block_b                      # multiple of 8 -> valid sublane tile
        b_pad = pl.cdiv(B, tb) * tb
        if b_pad != B:
            x = jnp.pad(x, ((0, b_pad - B), (0, 0)))

    weights = (prepped["w1u"], prepped["b1u"],
               prepped["w2u"], prepped["b2u"],
               prepped["w3u"], prepped["b3u"],
               prepped["fc1_w"], prepped["fc1_b"],
               prepped["fc2_w"], prepped["fc2_b"],
               prepped["fc3_w"], prepped["fc3_b"],
               prepped["gmask"])

    def const_spec(a):
        nd = a.ndim
        return pl.BlockSpec(tuple(a.shape), lambda i, _n=nd: (0,) * _n)

    out_flat = pl.pallas_call(
        _actor_fused_kernel,
        out_shape=jax.ShapeDtypeStruct((b_pad, AC), jnp.float32),
        grid=(b_pad // tb,),
        in_specs=[pl.BlockSpec((tb, flat_in), lambda i: (i, 0))]
                 + [const_spec(a) for a in weights],
        out_specs=pl.BlockSpec((tb, AC), lambda i: (i, 0)),
        compiler_params=pltpu.CompilerParams(
            dimension_semantics=("parallel",)),   # v7x: 2 TCs split the batch tiles
    )(x, *weights)

    return out_flat[:B].reshape(B, n_actions, n_choices)


# --------------------- one-time parameter preparation -----------------------

def prepare_params(params, input_dims, n_actions, n_choices):
    """Done ONCE, outside the forward path (no per-forward transposes/casts)."""
    H, W = input_dims

    def unroll_conv(w_t, h, w_, stride=2, pad=2):
        """torch (C_out, C_in, k, k) conv -> dense channels-last Toeplitz matrix
        mapping (h, w, c_in)-flattened input to (oh, ow, c_out)-flattened output;
        zero padding is folded in (padded taps simply contribute nothing)."""
        wt = np.asarray(w_t, np.float32)
        c_out, c_in, k, _ = wt.shape
        oh_n = (h + 2 * pad - k) // stride + 1
        ow_n = (w_ + 2 * pad - k) // stride + 1
        m = np.zeros((h, w_, c_in, oh_n, ow_n, c_out), np.float32)
        for oh in range(oh_n):
            for kh in range(k):
                ih = oh * stride + kh - pad
                if ih < 0 or ih >= h:
                    continue
                for ow in range(ow_n):
                    for kw in range(k):
                        iw = ow * stride + kw - pad
                        if iw < 0 or iw >= w_:
                            continue
                        m[ih, iw, :, oh, ow, :] += wt[:, :, kh, kw].T
        return m.reshape(h * w_ * c_in, oh_n * ow_n * c_out), oh_n, ow_n

    w1u, oh1, ow1 = unroll_conv(params["conv1_w"], H, W)
    w2u, oh2, ow2 = unroll_conv(params["conv2_w"], oh1, ow1)
    w3u, oh3, ow3 = unroll_conv(params["conv3_w"], oh2, ow2)

    def tile_bias(b, n_pos):   # per-output-position bias, (1, n_pos * C)
        return np.tile(np.asarray(b, np.float32), n_pos)[None, :]

    c3 = params["conv3_w"].shape[0]
    # our (h, w, c) flatten index -> torch (c, h, w) flatten index
    perm = np.transpose(np.arange(c3 * oh3 * ow3).reshape(c3, oh3, ow3),
                        (1, 2, 0)).reshape(-1)

    AC = n_actions * n_choices
    grp = np.arange(AC) // n_choices
    gmask = (grp[:, None] == grp[None, :]).astype(np.float32)   # block-diag ones

    f32 = lambda a: np.asarray(a, np.float32)
    prepped = {
        "w1u": w1u, "b1u": tile_bias(params["conv1_b"], oh1 * ow1),
        "w2u": w2u, "b2u": tile_bias(params["conv2_b"], oh2 * ow2),
        "w3u": w3u, "b3u": tile_bias(params["conv3_b"], oh3 * ow3),
        "fc1_w": f32(params["fc1_w"]).T[perm, :],          # (flat, hidden)
        "fc1_b": f32(params["fc1_b"])[None, :],
        "fc2_w": f32(params["fc2_w"]),                     # (1, hidden) — VPU broadcast
        "fc2_b": f32(params["fc2_b"]).reshape(1, 1),
        "fc3_w": f32(params["fc3_w"]).reshape(1, AC),      # (1, A*C) — VPU broadcast
        "fc3_b": f32(params["fc3_b"]).reshape(1, AC),
        "gmask": gmask,                                    # (A*C, A*C) group-sum matrix
    }
    # Big matrices in bf16 (DMA bytes halved, MXU-friendly); everything else f32.
    bf16_keys = {"w1u", "w2u", "w3u", "fc1_w"}
    return {k: jnp.asarray(v, jnp.bfloat16 if k in bf16_keys else jnp.float32)
            for k, v in prepped.items()}


# --------------------------- parameter creation ------------------------------

def init_params(key, input_dims, n_actions, n_choices,
                conv_channels=(16, 32, 64), hidden=256):
    def uinit(k, shape, fan_in):
        bound = 1.0 / float(fan_in) ** 0.5
        return jax.random.uniform(k, shape, jnp.float32, -bound, bound)

    keys = jax.random.split(key, 12)
    c0, c1, c2 = conv_channels
    flat = c2 * (input_dims[0] // 8) * (input_dims[1] // 8)
    params = {
        "conv1_w": uinit(keys[0], (c0, 1, 5, 5), 1 * 25),
        "conv1_b": uinit(keys[1], (c0,), 1 * 25),
        "conv2_w": uinit(keys[2], (c1, c0, 5, 5), c0 * 25),
        "conv2_b": uinit(keys[3], (c1,), c0 * 25),
        "conv3_w": uinit(keys[4], (c2, c1, 5, 5), c1 * 25),
        "conv3_b": uinit(keys[5], (c2,), c1 * 25),
        "fc1_w": uinit(keys[6], (hidden, flat), flat),       # torch Linear: (out, in)
        "fc1_b": uinit(keys[7], (hidden,), flat),
        "fc2_w": uinit(keys[8], (1, hidden), hidden),
        "fc2_b": uinit(keys[9], (1,), hidden),
        "fc3_w": uinit(keys[10], (n_actions * n_choices, 1), 1),
        "fc3_b": uinit(keys[11], (n_actions * n_choices,), 1),
    }
    return params


# ----------------------------- pure-JAX reference ----------------------------

def reference_forward(params, state, n_actions, n_choices):
    lrelu = lambda v: jnp.where(v >= 0, v, NEG_SLOPE * v)

    def conv(x, w, b):
        y = jax.lax.conv_general_dilated(
            x, w, window_strides=(2, 2), padding=((2, 2), (2, 2)),
            dimension_numbers=("NCHW", "OIHW", "NCHW"))
        return lrelu(y + b[None, :, None, None])

    x = conv(state, params["conv1_w"], params["conv1_b"])
    x = conv(x, params["conv2_w"], params["conv2_b"])
    x = conv(x, params["conv3_w"], params["conv3_b"])
    B = x.shape[0]
    x = x.reshape(B, -1)
    x = lrelu(x @ params["fc1_w"].T + params["fc1_b"])
    x = lrelu(x @ params["fc2_w"].T + params["fc2_b"])
    logits = (x @ params["fc3_w"].T + params["fc3_b"]).reshape(B, n_actions, n_choices)
    return jax.nn.softmax(logits, axis=2)


# ----------------------------------- main ------------------------------------

if __name__ == "__main__":
    input_dims = (16, 16)
    batch, n_actions, n_choices = 2, 4, 3

    key = jax.random.PRNGKey(0)
    pkey, xkey = jax.random.split(key)
    params = init_params(pkey, input_dims, n_actions, n_choices)
    state = jax.random.normal(xkey, (batch, 1, *input_dims), jnp.float32)  # NCHW

    prepped = prepare_params(params, input_dims, n_actions, n_choices)

    probs = actor_forward(prepped, state, n_actions=n_actions, n_choices=n_choices)
    probs = jax.block_until_ready(probs)

    ref = reference_forward(params, state, n_actions, n_choices)
    assert probs.shape == (batch, n_actions, n_choices)
    # Tolerances loosened for bf16 weights/activations + approx EUP reciprocal.
    assert jnp.allclose(jnp.sum(probs, axis=2), 1.0, atol=1e-2)
    assert jnp.allclose(probs, ref, atol=2e-2, rtol=2e-2)

    print("KERNEL_OK")
</pallas_src>

<mosaic_0001>
module attributes {stable_mosaic.version = 11 : i64} {
  func.func @_actor_fused_kernel(%arg0: i32, %arg1: memref<2x256xbf16, #tpu.memory_space<vmem>>, %arg2: memref<256x1024xbf16, #tpu.memory_space<vmem>>, %arg3: memref<1x1024xf32, #tpu.memory_space<vmem>>, %arg4: memref<1024x512xbf16, #tpu.memory_space<vmem>>, %arg5: memref<1x512xf32, #tpu.memory_space<vmem>>, %arg6: memref<512x256xbf16, #tpu.memory_space<vmem>>, %arg7: memref<1x256xf32, #tpu.memory_space<vmem>>, %arg8: memref<256x256xbf16, #tpu.memory_space<vmem>>, %arg9: memref<1x256xf32, #tpu.memory_space<vmem>>, %arg10: memref<1x256xf32, #tpu.memory_space<vmem>>, %arg11: memref<1x1xf32, #tpu.memory_space<vmem>>, %arg12: memref<1x12xf32, #tpu.memory_space<vmem>>, %arg13: memref<1x12xf32, #tpu.memory_space<vmem>>, %arg14: memref<12x12xf32, #tpu.memory_space<vmem>>, %arg15: memref<2x12xf32, #tpu.memory_space<vmem>>) attributes {dimension_semantics = [#tpu.dimension_semantics<parallel>], iteration_bounds = array<i64: 1>, scalar_prefetch = 0 : i64, scratch_operands = 0 : i64, tpu.core_type = #tpu.core_type<tc>, window_params = [{transform_indices = @transform_0, window_bounds = array<i64: 2, 256>}, {pipeline_mode = #tpu.pipeline_mode<synchronous>, transform_indices = @transform_1, window_bounds = array<i64: 256, 1024>}, {pipeline_mode = #tpu.pipeline_mode<synchronous>, transform_indices = @transform_2, window_bounds = array<i64: 1, 1024>}, {pipeline_mode = #tpu.pipeline_mode<synchronous>, transform_indices = @transform_3, window_bounds = array<i64: 1024, 512>}, {pipeline_mode = #tpu.pipeline_mode<synchronous>, transform_indices = @transform_4, window_bounds = array<i64: 1, 512>}, {pipeline_mode = #tpu.pipeline_mode<synchronous>, transform_indices = @transform_5, window_bounds = array<i64: 512, 256>}, {pipeline_mode = #tpu.pipeline_mode<synchronous>, transform_indices = @transform_6, window_bounds = array<i64: 1, 256>}, {pipeline_mode = #tpu.pipeline_mode<synchronous>, transform_indices = @transform_7, window_bounds = array<i64: 256, 256>}, {pipeline_mode = #tpu.pipeline_mode<synchronous>, transform_indices = @transform_8, window_bounds = array<i64: 1, 256>}, {pipeline_mode = #tpu.pipeline_mode<synchronous>, transform_indices = @transform_9, window_bounds = array<i64: 1, 256>}, {pipeline_mode = #tpu.pipeline_mode<synchronous>, transform_indices = @transform_10, window_bounds = array<i64: 1, 1>}, {pipeline_mode = #tpu.pipeline_mode<synchronous>, transform_indices = @transform_11, window_bounds = array<i64: 1, 12>}, {pipeline_mode = #tpu.pipeline_mode<synchronous>, transform_indices = @transform_12, window_bounds = array<i64: 1, 12>}, {pipeline_mode = #tpu.pipeline_mode<synchronous>, transform_indices = @transform_13, window_bounds = array<i64: 12, 12>}, {transform_indices = @transform_14, window_bounds = array<i64: 2, 12>}]} {
    %c0 = arith.constant 0 : index
    %c0_0 = arith.constant 0 : index
    %0 = vector.load %arg1[%c0, %c0_0] : memref<2x256xbf16, #tpu.memory_space<vmem>>, vector<2x256xbf16>
    %c0_1 = arith.constant 0 : index
    %c0_2 = arith.constant 0 : index
    %1 = vector.load %arg2[%c0_1, %c0_2] : memref<256x1024xbf16, #tpu.memory_space<vmem>>, vector<256x1024xbf16>
    %cst = arith.constant dense<0.000000e+00> : vector<2x1024xf32>
    %2 = tpu.matmul %0, %1, %cst {dimension_numbers = #tpu.dot_dimension_numbers<[1], [0], [0], [1], [0, 0, 1, 1], [], []>} : vector<2x256xbf16>, vector<256x1024xbf16>, vector<2x1024xf32> -> vector<2x1024xf32>
    %c0_3 = arith.constant 0 : index
    %c0_4 = arith.constant 0 : index
    %3 = vector.load %arg3[%c0_3, %c0_4] : memref<1x1024xf32, #tpu.memory_space<vmem>>, vector<1x1024xf32>
    %4 = vector.broadcast %3 : vector<1x1024xf32> to vector<2x1024xf32>
    %5 = arith.addf %2, %4 : vector<2x1024xf32>
    %cst_5 = arith.constant 0.000000e+00 : f32
    %6 = vector.broadcast %cst_5 : f32 to vector<2x1024xf32>
    %7 = arith.cmpf oge, %5, %6 : vector<2x1024xf32>
    %cst_6 = arith.constant 0.00999999977 : f32
    %8 = vector.broadcast %cst_6 : f32 to vector<2x1024xf32>
    %9 = arith.mulf %8, %5 : vector<2x1024xf32>
    %10 = arith.select %7, %5, %9 : vector<2x1024xi1>, vector<2x1024xf32>
    %11 = arith.truncf %10 : vector<2x1024xf32> to vector<2x1024xbf16>
    %c0_7 = arith.constant 0 : index
    %c0_8 = arith.constant 0 : index
    %12 = vector.load %arg4[%c0_7, %c0_8] : memref<1024x512xbf16, #tpu.memory_space<vmem>>, vector<1024x512xbf16>
    %cst_9 = arith.constant dense<0.000000e+00> : vector<2x512xf32>
    %13 = tpu.matmul %11, %12, %cst_9 {dimension_numbers = #tpu.dot_dimension_numbers<[1], [0], [0], [1], [0, 0, 1, 1], [], []>} : vector<2x1024xbf16>, vector<1024x512xbf16>, vector<2x512xf32> -> vector<2x512xf32>
    %c0_10 = arith.constant 0 : index
    %c0_11 = arith.constant 0 : index
    %14 = vector.load %arg5[%c0_10, %c0_11] : memref<1x512xf32, #tpu.memory_space<vmem>>, vector<1x512xf32>
    %15 = vector.broadcast %14 : vector<1x512xf32> to vector<2x512xf32>
    %16 = arith.addf %13, %15 : vector<2x512xf32>
    %cst_12 = arith.constant 0.000000e+00 : f32
    %17 = vector.broadcast %cst_12 : f32 to vector<2x512xf32>
    %18 = arith.cmpf oge, %16, %17 : vector<2x512xf32>
    %cst_13 = arith.constant 0.00999999977 : f32
    %19 = vector.broadcast %cst_13 : f32 to vector<2x512xf32>
    %20 = arith.mulf %19, %16 : vector<2x512xf32>
    %21 = arith.select %18, %16, %20 : vector<2x512xi1>, vector<2x512xf32>
    %22 = arith.truncf %21 : vector<2x512xf32> to vector<2x512xbf16>
    %c0_14 = arith.constant 0 : index
    %c0_15 = arith.constant 0 : index
    %23 = vector.load %arg6[%c0_14, %c0_15] : memref<512x256xbf16, #tpu.memory_space<vmem>>, vector<512x256xbf16>
    %cst_16 = arith.constant dense<0.000000e+00> : vector<2x256xf32>
    %24 = tpu.matmul %22, %23, %cst_16 {dimension_numbers = #tpu.dot_dimension_numbers<[1], [0], [0], [1], [0, 0, 1, 1], [], []>} : vector<2x512xbf16>, vector<512x256xbf16>, vector<2x256xf32> -> vector<2x256xf32>
    %c0_17 = arith.constant 0 : index
    %c0_18 = arith.constant 0 : index
    %25 = vector.load %arg7[%c0_17, %c0_18] : memref<1x256xf32, #tpu.memory_space<vmem>>, vector<1x256xf32>
    %26 = vector.broadcast %25 : vector<1x256xf32> to vector<2x256xf32>
    %27 = arith.addf %24, %26 : vector<2x256xf32>
    %cst_19 = arith.constant 0.000000e+00 : f32
    %28 = vector.broadcast %cst_19 : f32 to vector<2x256xf32>
    %29 = arith.cmpf oge, %27, %28 : vector<2x256xf32>
    %cst_20 = arith.constant 0.00999999977 : f32
    %30 = vector.broadcast %cst_20 : f32 to vector<2x256xf32>
    %31 = arith.mulf %30, %27 : vector<2x256xf32>
    %32 = arith.select %29, %27, %31 : vector<2x256xi1>, vector<2x256xf32>
    %33 = arith.truncf %32 : vector<2x256xf32> to vector<2x256xbf16>
    %c0_21 = arith.constant 0 : index
    %c0_22 = arith.constant 0 : index
    %34 = vector.load %arg8[%c0_21, %c0_22] : memref<256x256xbf16, #tpu.memory_space<vmem>>, vector<256x256xbf16>
    %cst_23 = arith.constant dense<0.000000e+00> : vector<2x256xf32>
    %35 = tpu.matmul %33, %34, %cst_23 {dimension_numbers = #tpu.dot_dimension_numbers<[1], [0], [0], [1], [0, 0, 1, 1], [], []>} : vector<2x256xbf16>, vector<256x256xbf16>, vector<2x256xf32> -> vector<2x256xf32>
    %c0_24 = arith.constant 0 : index
    %c0_25 = arith.constant 0 : index
    %36 = vector.load %arg9[%c0_24, %c0_25] : memref<1x256xf32, #tpu.memory_space<vmem>>, vector<1x256xf32>
    %37 = vector.broadcast %36 : vector<1x256xf32> to vector<2x256xf32>
    %38 = arith.addf %35, %37 : vector<2x256xf32>
    %cst_26 = arith.constant 0.000000e+00 : f32
    %39 = vector.broadcast %cst_26 : f32 to vector<2x256xf32>
    %40 = arith.cmpf oge, %38, %39 : vector<2x256xf32>
    %cst_27 = arith.constant 0.00999999977 : f32
    %41 = vector.broadcast %cst_27 : f32 to vector<2x256xf32>
    %42 = arith.mulf %41, %38 : vector<2x256xf32>
    %43 = arith.select %40, %38, %42 : vector<2x256xi1>, vector<2x256xf32>
    %c0_28 = arith.constant 0 : index
    %c0_29 = arith.constant 0 : index
    %44 = vector.load %arg10[%c0_28, %c0_29] : memref<1x256xf32, #tpu.memory_space<vmem>>, vector<1x256xf32>
    %45 = vector.broadcast %44 : vector<1x256xf32> to vector<2x256xf32>
    %46 = arith.mulf %43, %45 : vector<2x256xf32>
    %cst_30 = arith.constant dense<0.000000e+00> : vector<2xf32>
    %47 = vector.multi_reduction <add>, %46, %cst_30 [1] : vector<2x256xf32> to vector<2xf32>
    %48 = vector.shape_cast %47 : vector<2xf32> to vector<2x1xf32>
    %c0_31 = arith.constant 0 : index
    %c0_32 = arith.constant 0 : index
    %49 = vector.load %arg11[%c0_31, %c0_32] : memref<1x1xf32, #tpu.memory_space<vmem>>, vector<1x1xf32>
    %50 = vector.broadcast %49 : vector<1x1xf32> to vector<2x1xf32>
    %51 = arith.addf %48, %50 : vector<2x1xf32>
    %cst_33 = arith.constant 0.000000e+00 : f32
    %52 = vector.broadcast %cst_33 : f32 to vector<2x1xf32>
    %53 = arith.cmpf oge, %51, %52 : vector<2x1xf32>
    %cst_34 = arith.constant 0.00999999977 : f32
    %54 = vector.broadcast %cst_34 : f32 to vector<2x1xf32>
    %55 = arith.mulf %54, %51 : vector<2x1xf32>
    %56 = arith.select %53, %51, %55 : vector<2x1xi1>, vector<2x1xf32>
    %c0_35 = arith.constant 0 : index
    %c0_36 = arith.constant 0 : index
    %57 = vector.load %arg12[%c0_35, %c0_36] : memref<1x12xf32, #tpu.memory_space<vmem>>, vector<1x12xf32>
    %58 = vector.broadcast %56 : vector<2x1xf32> to vector<2x12xf32>
    %59 = vector.broadcast %57 : vector<1x12xf32> to vector<2x12xf32>
    %60 = arith.mulf %58, %59 : vector<2x12xf32>
    %c0_37 = arith.constant 0 : index
    %c0_38 = arith.constant 0 : index
    %61 = vector.load %arg13[%c0_37, %c0_38] : memref<1x12xf32, #tpu.memory_space<vmem>>, vector<1x12xf32>
    %62 = vector.broadcast %61 : vector<1x12xf32> to vector<2x12xf32>
    %63 = arith.addf %60, %62 : vector<2x12xf32>
    %cst_39 = arith.constant dense<0xFF800000> : vector<2xf32>
    %64 = vector.multi_reduction <maximumf>, %63, %cst_39 [1] : vector<2x12xf32> to vector<2xf32>
    %65 = vector.shape_cast %64 : vector<2xf32> to vector<2x1xf32>
    %66 = vector.broadcast %65 : vector<2x1xf32> to vector<2x12xf32>
    %67 = arith.subf %63, %66 : vector<2x12xf32>
    %68 = math.exp %67 : vector<2x12xf32>
    %c0_40 = arith.constant 0 : index
    %c0_41 = arith.constant 0 : index
    %69 = vector.load %arg14[%c0_40, %c0_41] : memref<12x12xf32, #tpu.memory_space<vmem>>, vector<12x12xf32>
    %cst_42 = arith.constant dense<0.000000e+00> : vector<2x12xf32>
    %70 = tpu.matmul %68, %69, %cst_42 {dimension_numbers = #tpu.dot_dimension_numbers<[1], [0], [0], [1], [0, 0, 1, 1], [], []>} : vector<2x12xf32>, vector<12x12xf32>, vector<2x12xf32> -> vector<2x12xf32>
    %71 = tpu.reciprocal %70 {approx = true} : vector<2x12xf32> -> vector<2x12xf32>
    %72 = arith.mulf %68, %71 : vector<2x12xf32>
    %c0_43 = arith.constant 0 : index
    %c0_44 = arith.constant 0 : index
    %73 = vector.load %arg15[%c0_43, %c0_44] : memref<2x12xf32, #tpu.memory_space<vmem>>, vector<2x12xf32>
    tpu.vector_store %arg15[%c0_43, %c0_44], %72 {strides = array<i32>} : memref<2x12xf32, #tpu.memory_space<vmem>>, vector<2x12xf32>,
    return
  }
  func.func @transform_0(%arg0: i32) -> (i32, i32) {
    %c0_i32 = arith.constant 0 : i32
    %c0_i32_0 = arith.constant 0 : i32
    return %arg0, %c0_i32 : i32, i32
  }
  func.func @transform_1(%arg0: i32) -> (i32, i32) {
    %c0_i32 = arith.constant 0 : i32
    %c0_i32_0 = arith.constant 0 : i32
    %c0_i32_1 = arith.constant 0 : i32
    return %c0_i32, %c0_i32_0 : i32, i32
  }
  func.func @transform_2(%arg0: i32) -> (i32, i32) {
    %c0_i32 = arith.constant 0 : i32
    %c0_i32_0 = arith.constant 0 : i32
    %c0_i32_1 = arith.constant 0 : i32
    return %c0_i32, %c0_i32_0 : i32, i32
  }
  func.func @transform_3(%arg0: i32) -> (i32, i32) {
    %c0_i32 = arith.constant 0 : i32
    %c0_i32_0 = arith.constant 0 : i32
    %c0_i32_1 = arith.constant 0 : i32
    return %c0_i32, %c0_i32_0 : i32, i32
  }
  func.func @transform_4(%arg0: i32) -> (i32, i32) {
    %c0_i32 = arith.constant 0 : i32
    %c0_i32_0 = arith.constant 0 : i32
    %c0_i32_1 = arith.constant 0 : i32
    return %c0_i32, %c0_i32_0 : i32, i32
  }
  func.func @transform_5(%arg0: i32) -> (i32, i32) {
    %c0_i32 = arith.constant 0 : i32
    %c0_i32_0 = arith.constant 0 : i32
    %c0_i32_1 = arith.constant 0 : i32
    return %c0_i32, %c0_i32_0 : i32, i32
  }
  func.func @transform_6(%arg0: i32) -> (i32, i32) {
    %c0_i32 = arith.constant 0 : i32
    %c0_i32_0 = arith.constant 0 : i32
    %c0_i32_1 = arith.constant 0 : i32
    return %c0_i32, %c0_i32_0 : i32, i32
  }
  func.func @transform_7(%arg0: i32) -> (i32, i32) {
    %c0_i32 = arith.constant 0 : i32
    %c0_i32_0 = arith.constant 0 : i32
    %c0_i32_1 = arith.constant 0 : i32
    return %c0_i32, %c0_i32_0 : i32, i32
  }
  func.func @transform_8(%arg0: i32) -> (i32, i32) {
    %c0_i32 = arith.constant 0 : i32
    %c0_i32_0 = arith.constant 0 : i32
    %c0_i32_1 = arith.constant 0 : i32
    return %c0_i32, %c0_i32_0 : i32, i32
  }
  func.func @transform_9(%arg0: i32) -> (i32, i32) {
    %c0_i32 = arith.constant 0 : i32
    %c0_i32_0 = arith.constant 0 : i32
    %c0_i32_1 = arith.constant 0 : i32
    return %c0_i32, %c0_i32_0 : i32, i32
  }
  func.func @transform_10(%arg0: i32) -> (i32, i32) {
    %c0_i32 = arith.constant 0 : i32
    %c0_i32_0 = arith.constant 0 : i32
    %c0_i32_1 = arith.constant 0 : i32
    return %c0_i32, %c0_i32_0 : i32, i32
  }
  func.func @transform_11(%arg0: i32) -> (i32, i32) {
    %c0_i32 = arith.constant 0 : i32
    %c0_i32_0 = arith.constant 0 : i32
    %c0_i32_1 = arith.constant 0 : i32
    return %c0_i32, %c0_i32_0 : i32, i32
  }
  func.func @transform_12(%arg0: i32) -> (i32, i32) {
    %c0_i32 = arith.constant 0 : i32
    %c0_i32_0 = arith.constant 0 : i32
    %c0_i32_1 = arith.constant 0 : i32
    return %c0_i32, %c0_i32_0 : i32, i32
  }
  func.func @transform_13(%arg0: i32) -> (i32, i32) {
    %c0_i32 = arith.constant 0 : i32
    %c0_i32_0 = arith.constant 0 : i32
    %c0_i32_1 = arith.constant 0 : i32
    return %c0_i32, %c0_i32_0 : i32, i32
  }
  func.func @transform_14(%arg0: i32) -> (i32, i32) {
    %c0_i32 = arith.constant 0 : i32
    %c0_i32_0 = arith.constant 0 : i32
    return %arg0, %c0_i32 : i32, i32
  }
}

</mosaic_0001>

<bundles_post_ra>
// kernel: actor_forward.1
= control target key start
LH: loop header
LB: loop body
LE: loop exit
PB: predicated region body
PF: predicated region fallthrough
CT: control target
= control target key end

     0   :  { %s5308_s0 = inlined_call_operand.vmem [shape: bf16[2,256], index: 0, kind: input, shape index: {}]   ;;  %s5309_s1 = inlined_call_operand.hbm [shape: bf16[256,1024], index: 1, kind: input, shape index: {}]   ;;  %s5310_s2 = inlined_call_operand.vmem [shape: f32[1,1024], index: 2, kind: input, shape index: {}]   ;;  %s5311_s3 = inlined_call_operand.hbm [shape: bf16[1024,512], index: 3, kind: input, shape index: {}]   ;;  %s5312_s4 = inlined_call_operand.vmem [shape: f32[1,512], index: 4, kind: input, shape index: {}]   ;;  %s5313_s5 = inlined_call_operand.hbm [shape: bf16[512,256], index: 5, kind: input, shape index: {}]   ;;  %s5314_s6 = inlined_call_operand.vmem [shape: f32[1,256], index: 6, kind: input, shape index: {}]   ;;  %s5315_s7 = inlined_call_operand.hbm [shape: bf16[256,256], index: 7, kind: input, shape index: {}]   ;;  %s5316_s8 = inlined_call_operand.vmem [shape: f32[1,256], index: 8, kind: input, shape index: {}]   ;;  %s5317_s9 = inlined_call_operand.vmem [shape: f32[1,256], index: 9, kind: input, shape index: {}]   ;;  %s5318_s10 = inlined_call_operand.<no memory space> [shape: f32[1,1], index: 10, kind: input, shape index: {}]   ;;  %s5319_s11 = inlined_call_operand.vmem [shape: f32[1,12], index: 11, kind: input, shape index: {}]   ;;  %s5320_s12 = inlined_call_operand.vmem [shape: f32[1,12], index: 12, kind: input, shape index: {}]   ;;  %s5321_s13 = inlined_call_operand.vmem [shape: f32[12,12], index: 13, kind: input, shape index: {}]   ;;  %s5322_s14 = inlined_call_operand.vmem [shape: f32[2,12], index: 14, kind: output, shape index: {}]  }
   0x1   :  { %v19_v0 = vstv %s5318_s10 }
   0x2   :  { %20 = vst [vmem:[#allocation2] sm:$0x1] %v19_v0 }
   0x3   :  { %21 = vsyncpa [#allocation4], 0 }
   0x4   :  { %22 = vsyncpa [#allocation6], 0 }
   0x5   :  { %23 = vsyncpa [#allocation9], 0  ;;  %s5053_s15 = smov [#allocation5]  }
   0x6   :  { %s45_s16 = sshll.u32 %s5053_s15, 4  ;;  %s46_s16 = int_to_ptr.vmem [resolvable:$true] %s45_s16 }
   0x7   :  { %s4975_s17 = scalar_lea.vmem %s46_s16, 32768  ;;  %p4980_p1 = scmp.lt.s32.totalorder %s46_s16, %s46_s16 }
   0x8   :  { %p4976_p0 = scmp.ne.s32.totalorder %s46_s16, %s4975_s17  ;;  %p4981_p2 = scmp.lt.s32.totalorder %s4975_s17, %s4975_s17 }
   0xa   :  { %p4982_p3 = por %p4981_p2, %p4980_p1 }
   0xc   :  { %p4983_p4 = pnand %p4982_p3, %p4976_p0 }
   0xe   :  { %4986 = shalt.err (!%p4983_p4)
}
   0xf   :  { %s5054_s18 = smov 256   ;;  %s5055_s19 = smov 16  }
  0x10   :  { %51 = dma.hbm_to_vmem [thread:$0]  %s5311_s3, 32768, %s46_s16, [#allocation6], %s5054_s18, %s5054_s18, %s5055_s19  }
  0x11   :  { %s5056_s10 = smov [#allocation3]  }
  0x12   :  { %s31_s22 = sshll.u32 %s5056_s10, 4  ;;  %s32_s22 = int_to_ptr.vmem [resolvable:$true] %s31_s22 }
  0x13   :  { %s4995_s23 = scalar_lea.vmem %s32_s22, 16384  ;;  %p5000_p6 = scmp.lt.s32.totalorder %s32_s22, %s32_s22 }
  0x14   :  { %p4996_p5 = scmp.ne.s32.totalorder %s32_s22, %s4995_s23  ;;  %p5001_p7 = scmp.lt.s32.totalorder %s4995_s23, %s4995_s23 }
  0x16   :  { %p5002_p8 = por %p5001_p7, %p5000_p6 }
  0x18   :  { %p5003_p9 = pnand %p5002_p8, %p4996_p5 }
  0x1a   :  { %5006 = shalt.err (!%p5003_p9)
}
  0x1b   :  { %s5057_s24 = smov 512   ;;  %s5058_s25 = smov 32  }
  0x1c   :  { %37 = dma.hbm_to_vmem [thread:$0]  %s5309_s1, 16384, %s32_s22, [#allocation4], %s5057_s24, %s5057_s24, %s5058_s25  }
  0x1d   :  { %s5059_s28 = smov [#allocation7]  }
  0x1e   :  { %s59_s29 = sshll.u32 %s5059_s28, 4  ;;  %s60_s29 = int_to_ptr.vmem [resolvable:$true] %s59_s29 }
  0x1f   :  { %s5015_s3 = scalar_lea.vmem %s60_s29, 8192  ;;  %p5020_p11 = scmp.lt.s32.totalorder %s60_s29, %s60_s29 }
  0x20   :  { %p5016_p10 = scmp.ne.s32.totalorder %s60_s29, %s5015_s3  ;;  %p5021_p12 = scmp.lt.s32.totalorder %s5015_s3, %s5015_s3 }
  0x22   :  { %p5022_p13 = por %p5021_p12, %p5020_p11 }
  0x24   :  { %p5023_p0 = pnand %p5022_p13, %p5016_p10 }
  0x26   :  { %5026 = shalt.err (!%p5023_p0)
}
  0x27   :  { %s5060_s30 = smov 128   ;;  %s5061_s15 = smov 8  }
  0x28   :  { %65 = dma.hbm_to_vmem [thread:$0]  %s5313_s5, 8192, %s60_s29, [#allocation6], %s5060_s30, %s5060_s30, %s5061_s15  }
  0x29   :  { %s5062_s18 = smov [#allocation8]  }
  0x2a   :  { %s73_s19 = sshll.u32 %s5062_s18, 4  ;;  %s74_s19 = int_to_ptr.vmem [resolvable:$true] %s73_s19 }
  0x2b   :  { %s5035_s1 = scalar_lea.vmem %s74_s19, 4096  ;;  %p5040_p2 = scmp.lt.s32.totalorder %s74_s19, %s74_s19 }
  0x2c   :  { %p5036_p1 = scmp.ne.s32.totalorder %s74_s19, %s5035_s1  ;;  %p5041_p3 = scmp.lt.s32.totalorder %s5035_s1, %s5035_s1 }
  0x2e   :  { %p5042_p4 = por %p5041_p3, %p5040_p2 }
  0x30   :  { %p5043_p5 = pnand %p5042_p4, %p5036_p1 }
  0x32   :  { %5046 = shalt.err (!%p5043_p5)
}
  0x33   :  { %79 = dma.hbm_to_vmem [thread:$0]  %s5315_s7, 4096, %s74_s19, [#allocation9], %s5060_s30, %s5060_s30, %s5061_s15  }
  0x34   :  { %5047 = dma.done.wait [#allocation4], 16384  }
  0x35   :  { %5048 = vsyncadd [#allocation4], 4294950912 }
  0x36   :  { %5049 = dma.done.wait [#allocation6], 40960  }
  0x37   :  { %5050 = vsyncadd [#allocation6], 4294926336 }
  0x38   :  { %5051 = dma.done.wait [#allocation9], 4096  }
  0x39   :  { %5052 = vsyncadd [#allocation9], 4294963200  ;;  %v161_v1 = vld [vmem:[#allocation3 + $0x1c0] sm:$0xff]  ;;  %v162_v3 = vld [vmem:[#allocation3 + $0x1c8] sm:$0xff]  ;;  %v235_v36 = vlaneseq  ;;  %v5063_v37 = vmov 1966171168  }
  0x3a   :  { %v165_v2 = vld [vmem:[#allocation3 + $0x1e0] sm:$0xff]  ;;  %v166_v5 = vld [vmem:[#allocation3 + $0x1e8] sm:$0xff]  ;;  %v285_v38 = vunpack.c.l.s4 %v5063_v37 }
  0x3b   :  { %v3982_v4 = vcombine.high %v161_v1, %v165_v2  ;;  %v3981_v6 = vcombine.low %v161_v1, %v165_v2  ;;  %v153_v7 = vld [vmem:[#allocation3 + $0x180] sm:$0xff]  ;;  %v3984_v9 = vcombine.high %v162_v3, %v166_v5  ;;  %v3983_v10 = vcombine.low %v162_v3, %v166_v5  ;;  %v154_v12 = vld [vmem:[#allocation3 + $0x188] sm:$0xff] }
  0x3c   :  { %v157_v8 = vld [vmem:[#allocation3 + $0x1a0] sm:$0xff]  ;;  %v158_v13 = vld [vmem:[#allocation3 + $0x1a8] sm:$0xff]  ;;  %v5157_v47 = vshrl.u32 %v235_v36, 7  ;;  %v286_v48 = vunpack.c.0.s8 %v285_v38 }
  0x3d   :  { %v3974_v11 = vcombine.high %v153_v7, %v157_v8  ;;  %v145_v14 = vld [vmem:[#allocation3 + $0x140] sm:$0xff]  ;;  %940 = vmatprep.subr.bf16.mxu0 %v3982_v4  ;;  %v3976_v15 = vcombine.high %v154_v12, %v158_v13  ;;  %v146_v17 = vld [vmem:[#allocation3 + $0x148] sm:$0xff]  ;;  %981 = vmatprep.subr.bf16.mxu1 %v3984_v9  ;;  %v3973_v19 = vcombine.low %v153_v7, %v157_v8 }
  0x3e   :  { %v149_v16 = vld [vmem:[#allocation3 + $0x160] sm:$0xff]  ;;  %v150_v18 = vld [vmem:[#allocation3 + $0x168] sm:$0xff]  ;;  %941 = vmatpush1.bf16.msra.mxu0 %v3981_v6  ;;  %982 = vmatpush1.bf16.msra.mxu1 %v3983_v10  ;;  %v3975_v20 = vcombine.low %v154_v12, %v158_v13  ;;  %v5160_v57 = vsub.s32 %v286_v48, %v5157_v47 }
  0x3f   :  { %942 = vmatprep.subr.bf16.mxu0 %v3974_v11  ;;  %v3966_v21 = vcombine.high %v145_v14, %v149_v16  ;;  %983 = vmatprep.subr.bf16.mxu1 %v3976_v15  ;;  %v3968_v22 = vcombine.high %v146_v17, %v150_v18  ;;  %v137_v23 = vld [vmem:[#allocation3 + $0x100] sm:$0xff]  ;;  %v138_v25 = vld [vmem:[#allocation3 + $0x108] sm:$0xff]  ;;  %v3965_v27 = vcombine.low %v145_v14, %v149_v16 }
  0x40   :  { %v141_v24 = vld [vmem:[#allocation3 + $0x120] sm:$0xff]  ;;  %v142_v26 = vld [vmem:[#allocation3 + $0x128] sm:$0xff]  ;;  %v3967_v28 = vcombine.low %v146_v17, %v150_v18 }
  0x41   :  { %v3958_v29 = vcombine.high %v137_v23, %v141_v24  ;;  %v3960_v30 = vcombine.high %v138_v25, %v142_v26  ;;  %v129_v31 = vld [vmem:[#allocation3 + $0xc0] sm:$0xff]  ;;  %v130_v33 = vld [vmem:[#allocation3 + $0xc8] sm:$0xff]  ;;  %v3957_v35 = vcombine.low %v137_v23, %v141_v24  ;;  %v3959_v39 = vcombine.low %v138_v25, %v142_v26 }
  0x42   :  { %943 = vmatpush1.bf16.msra.mxu0 %v3973_v19  ;;  %984 = vmatpush1.bf16.msra.mxu1 %v3975_v20  ;;  %v133_v32 = vld [vmem:[#allocation3 + $0xe0] sm:$0xff]  ;;  %v134_v34 = vld [vmem:[#allocation3 + $0xe8] sm:$0xff] }
  0x43   :  { %944 = vmatprep.subr.bf16.mxu0 %v3966_v21  ;;  %985 = vmatprep.subr.bf16.mxu1 %v3968_v22  ;;  %v3950_v40 = vcombine.high %v129_v31, %v133_v32  ;;  %v3952_v41 = vcombine.high %v130_v33, %v134_v34  ;;  %v121_v42 = vld [vmem:[#allocation3 + $0x80] sm:$0xff]  ;;  %v122_v44 = vld [vmem:[#allocation3 + $0x88] sm:$0xff]  ;;  %v3949_v46 = vcombine.low %v129_v31, %v133_v32 }
  0x44   :  { %v125_v43 = vld [vmem:[#allocation3 + $0xa0] sm:$0xff]  ;;  %v126_v45 = vld [vmem:[#allocation3 + $0xa8] sm:$0xff]  ;;  %v3951_v49 = vcombine.low %v130_v33, %v134_v34 }
  0x45   :  { %v3942_v50 = vcombine.high %v121_v42, %v125_v43  ;;  %v3944_v51 = vcombine.high %v122_v44, %v126_v45  ;;  %v113_v52 = vld [vmem:[#allocation3 + $0x40] sm:$0xff]  ;;  %v114_v54 = vld [vmem:[#allocation3 + $0x48] sm:$0xff]  ;;  %v3941_v56 = vcombine.low %v121_v42, %v125_v43  ;;  %v3943_v58 = vcombine.low %v122_v44, %v126_v45 }
  0x46   :  { %945 = vmatpush1.bf16.msra.mxu0 %v3965_v27  ;;  %986 = vmatpush1.bf16.msra.mxu1 %v3967_v28  ;;  %v117_v53 = vld [vmem:[#allocation3 + $0x60] sm:$0xff]  ;;  %v118_v55 = vld [vmem:[#allocation3 + $0x68] sm:$0xff] }
  0x47   :  { %946 = vmatprep.subr.bf16.mxu0 %v3958_v29  ;;  %987 = vmatprep.subr.bf16.mxu1 %v3960_v30  ;;  %v3934_v59 = vcombine.high %v113_v52, %v117_v53  ;;  %v5165_v60 = vld.sshfl [vmem:[%s5308_s0] sm:$0x11 pattern:$0x75316420]  ;;  %v3936_v61 = vcombine.high %v114_v54, %v118_v55  ;;  %v106_v1 = vld [vmem:[#allocation3 + $0x8] sm:$0xff]  ;;  %v3933_v3 = vcombine.low %v113_v52, %v117_v53 }
  0x48   :  { %v105_v62 = vld [vmem:[#allocation3] sm:$0xff]  ;;  %v283_v0 = vcombine.high %v5165_v60, %v5165_v60  ;;  %v110_v2 = vld [vmem:[#allocation3 + $0x28] sm:$0xff]  ;;  %v3935_v5 = vcombine.low %v114_v54, %v118_v55 }
  0x49   :  { %v109_v63 = vld [vmem:[#allocation3 + $0x20] sm:$0xff]  ;;  %v3928_v7 = vcombine.high %v106_v1, %v110_v2  ;;  %v226_v10 = vld [vmem:[#allocation3 + $0x3c8] sm:$0xff]  ;;  %v3927_v13 = vcombine.low %v106_v1, %v110_v2 }
  0x4a   :  { %947 = vmatpush1.bf16.msra.mxu0 %v3957_v35  ;;  %988 = vmatpush1.bf16.msra.mxu1 %v3959_v39  ;;  %v5170_v4 = vrot.slane %v283_v0, %v5160_v57  ;;  %v3926_v6 = vcombine.high %v105_v62, %v109_v63  ;;  %v225_v8 = vld [vmem:[#allocation3 + $0x3c0] sm:$0xff]  ;;  %v230_v11 = vld [vmem:[#allocation3 + $0x3e8] sm:$0xff]  ;;  %v3925_v12 = vcombine.low %v105_v62, %v109_v63 }
  0x4b   :  { %948 = vmatprep.subr.bf16.mxu0 %v3950_v40  ;;  %989 = vmatprep.subr.bf16.mxu1 %v3952_v41  ;;  %v229_v9 = vld [vmem:[#allocation3 + $0x3e0] sm:$0xff]  ;;  %v4048_v15 = vcombine.high %v226_v10, %v230_v11  ;;  %v218_v18 = vld [vmem:[#allocation3 + $0x388] sm:$0xff]  ;;  %v4047_v21 = vcombine.low %v226_v10, %v230_v11  ;;  %v163_v11 = vld [vmem:[#allocation3 + $0x1d0] sm:$0xff] }
  0x4c   :  { %972 = vmatprep.mubr.bf16.mxu0 %v5170_v4  ;;  %1013 = vmatprep.mubr.bf16.mxu1 %v5170_v4  ;;  %v4046_v14 = vcombine.high %v225_v8, %v229_v9  ;;  %v217_v16 = vld [vmem:[#allocation3 + $0x380] sm:$0xff]  ;;  %v222_v19 = vld [vmem:[#allocation3 + $0x3a8] sm:$0xff]  ;;  %v4045_v20 = vcombine.low %v225_v8, %v229_v9 }
  0x4d   :  { %v221_v17 = vld [vmem:[#allocation3 + $0x3a0] sm:$0xff]  ;;  %v4040_v23 = vcombine.high %v218_v18, %v222_v19  ;;  %v210_v26 = vld [vmem:[#allocation3 + $0x348] sm:$0xff]  ;;  %v4039_v29 = vcombine.low %v218_v18, %v222_v19  ;;  %v155_v19 = vld [vmem:[#allocation3 + $0x190] sm:$0xff] }
  0x4e   :  { %949 = vmatpush1.bf16.msra.mxu0 %v3949_v46  ;;  %990 = vmatpush1.bf16.msra.mxu1 %v3951_v49  ;;  %v4038_v22 = vcombine.high %v217_v16, %v221_v17  ;;  %v209_v24 = vld [vmem:[#allocation3 + $0x340] sm:$0xff]  ;;  %v214_v27 = vld [vmem:[#allocation3 + $0x368] sm:$0xff]  ;;  %v4037_v28 = vcombine.low %v217_v16, %v221_v17 }
  0x4f   :  { %950 = vmatprep.subr.bf16.mxu0 %v3942_v50  ;;  %991 = vmatprep.subr.bf16.mxu1 %v3944_v51  ;;  %v213_v25 = vld [vmem:[#allocation3 + $0x360] sm:$0xff]  ;;  %v4032_v31 = vcombine.high %v210_v26, %v214_v27  ;;  %v202_v34 = vld [vmem:[#allocation3 + $0x308] sm:$0xff]  ;;  %v4031_v37 = vcombine.low %v210_v26, %v214_v27 }
  0x50   :  { %v4030_v30 = vcombine.high %v209_v24, %v213_v25  ;;  %v201_v32 = vld [vmem:[#allocation3 + $0x300] sm:$0xff]  ;;  %v206_v35 = vld [vmem:[#allocation3 + $0x328] sm:$0xff]  ;;  %v4029_v36 = vcombine.low %v209_v24, %v213_v25  ;;  %v160_v24 = vld [vmem:[#allocation3 + $0x1b8] sm:$0xff] }
  0x51   :  { %v205_v33 = vld [vmem:[#allocation3 + $0x320] sm:$0xff]  ;;  %v4024_v39 = vcombine.high %v202_v34, %v206_v35  ;;  %v194_v42 = vld [vmem:[#allocation3 + $0x2c8] sm:$0xff]  ;;  %v4023_v45 = vcombine.low %v202_v34, %v206_v35  ;;  %v139_v34 = vld [vmem:[#allocation3 + $0x110] sm:$0xff] }
  0x52   :  { %951 = vmatpush1.bf16.msra.mxu0 %v3941_v56  ;;  %992 = vmatpush1.bf16.msra.mxu1 %v3943_v58  ;;  %v4022_v38 = vcombine.high %v201_v32, %v205_v33  ;;  %v193_v40 = vld [vmem:[#allocation3 + $0x2c0] sm:$0xff]  ;;  %v198_v43 = vld [vmem:[#allocation3 + $0x2e8] sm:$0xff]  ;;  %v4021_v44 = vcombine.low %v201_v32, %v205_v33  ;;  %v152_v32 = vld [vmem:[#allocation3 + $0x178] sm:$0xff] }
  0x53   :  { %952 = vmatprep.subr.bf16.mxu0 %v3934_v59  ;;  %993 = vmatprep.subr.bf16.mxu1 %v3936_v61  ;;  %v197_v41 = vld [vmem:[#allocation3 + $0x2e0] sm:$0xff]  ;;  %v4016_v49 = vcombine.high %v194_v42, %v198_v43  ;;  %v186_v51 = vld [vmem:[#allocation3 + $0x288] sm:$0xff]  ;;  %v4015_v54 = vcombine.low %v194_v42, %v198_v43  ;;  %v131_v42 = vld [vmem:[#allocation3 + $0xd0] sm:$0xff] }
  0x54   :  { %v4014_v46 = vcombine.high %v193_v40, %v197_v41  ;;  %v185_v48 = vld [vmem:[#allocation3 + $0x280] sm:$0xff]  ;;  %v190_v52 = vld [vmem:[#allocation3 + $0x2a8] sm:$0xff]  ;;  %v4013_v53 = vcombine.low %v193_v40, %v197_v41 }
  0x55   :  { %v189_v50 = vld [vmem:[#allocation3 + $0x2a0] sm:$0xff]  ;;  %v4008_v58 = vcombine.high %v186_v51, %v190_v52  ;;  %v178_v61 = vld [vmem:[#allocation3 + $0x248] sm:$0xff]  ;;  %v4007_v0 = vcombine.low %v186_v51, %v190_v52  ;;  %v123_v51 = vld [vmem:[#allocation3 + $0x90] sm:$0xff] }
  0x56   :  { %953 = vmatpush1.bf16.msra.mxu0 %v3933_v3  ;;  %994 = vmatpush1.bf16.msra.mxu1 %v3935_v5  ;;  %v4006_v55 = vcombine.high %v185_v48, %v189_v50  ;;  %v177_v56 = vld [vmem:[#allocation3 + $0x240] sm:$0xff]  ;;  %v182_v62 = vld [vmem:[#allocation3 + $0x268] sm:$0xff]  ;;  %v4005_v63 = vcombine.low %v185_v48, %v189_v50  ;;  %v127_v52 = vld [vmem:[#allocation3 + $0xb0] sm:$0xff] }
  0x57   :  { %954 = vmatprep.subr.bf16.mxu0 %v3926_v6  ;;  %995 = vmatprep.subr.bf16.mxu1 %v3928_v7  ;;  %v181_v59 = vld [vmem:[#allocation3 + $0x260] sm:$0xff]  ;;  %v4000_v3 = vcombine.high %v178_v61, %v182_v62  ;;  %v170_v6 = vld [vmem:[#allocation3 + $0x208] sm:$0xff]  ;;  %v3999_v9 = vcombine.low %v178_v61, %v182_v62  ;;  %v3946_v61 = vcombine.high %v123_v51, %v127_v52  ;;  %v116_v62 = vld [vmem:[#allocation3 + $0x58] sm:$0xff] }
  0x58   :  { %v3998_v1 = vcombine.high %v177_v56, %v181_v59  ;;  %v169_v2 = vld [vmem:[#allocation3 + $0x200] sm:$0xff]  ;;  %v174_v7 = vld [vmem:[#allocation3 + $0x228] sm:$0xff]  ;;  %v3997_v8 = vcombine.low %v177_v56, %v181_v59  ;;  %v115_v56 = vld [vmem:[#allocation3 + $0x50] sm:$0xff] }
  0x59   :  { %v173_v5 = vld [vmem:[#allocation3 + $0x220] sm:$0xff]  ;;  %v3991_v17 = vcombine.low %v170_v6, %v174_v7 }
  0x5a   :  { %955 = vmatpush1.bf16.msra.mxu0 %v3925_v12  ;;  %996 = vmatpush1.bf16.msra.mxu1 %v3927_v13  ;;  %v3990_v10 = vcombine.high %v169_v2, %v173_v5  ;;  %v3992_v12 = vcombine.high %v170_v6, %v174_v7  ;;  %v167_v13 = vld [vmem:[#allocation3 + $0x1f0] sm:$0xff]  ;;  %v3989_v16 = vcombine.low %v169_v2, %v173_v5  ;;  %v108_v7 = vld [vmem:[#allocation3 + $0x18] sm:$0xff] }
  0x5b   :  { %956 = vmatprep.subr.bf16.mxu0 %v4046_v14  ;;  %997 = vmatprep.subr.bf16.mxu1 %v4048_v15  ;;  %v164_v14 = vld [vmem:[#allocation3 + $0x1d8] sm:$0xff]  ;;  %v3986_v18 = vcombine.high %v163_v11, %v167_v13  ;;  %v3985_v25 = vcombine.low %v163_v11, %v167_v13  ;;  %v107_v2 = vld [vmem:[#allocation3 + $0x10] sm:$0xff] }
  0x5c   :  { %v168_v15 = vld [vmem:[#allocation3 + $0x1f8] sm:$0xff]  ;;  %v227_v11 = vld [vmem:[#allocation3 + $0x3d0] sm:$0xff] }
  0x5d   :  { %v3987_v26 = vcombine.low %v164_v14, %v168_v15 }
  0x5e   :  { %957 = vmatpush2.bf16.msra.mxu0 %v4045_v20  ;;  %998 = vmatpush2.bf16.msra.mxu1 %v4047_v21  ;;  %v3988_v20 = vcombine.high %v164_v14, %v168_v15  ;;  %v159_v21 = vld [vmem:[#allocation3 + $0x1b0] sm:$0xff]  ;;  %v228_v15 = vld [vmem:[#allocation3 + $0x3d8] sm:$0xff] }
  0x5f   :  { %958 = vmatprep.subr.bf16.mxu0 %v4038_v22  ;;  %999 = vmatprep.subr.bf16.mxu1 %v4040_v23  ;;  %v156_v22 = vld [vmem:[#allocation3 + $0x198] sm:$0xff]  ;;  %v5176_v23 = vrot.slane %v5165_v60, %v5160_v57  ;;  %v3978_v27 = vcombine.high %v155_v19, %v159_v21  ;;  %v3977_v57 = vcombine.low %v155_v19, %v159_v21  ;;  %v219_v19 = vld [vmem:[#allocation3 + $0x390] sm:$0xff] }
  0x60   :  { %v3979_v60 = vcombine.low %v156_v22, %v160_v24 }
  0x62   :  { %959 = vmatpush2.bf16.msra.mxu0 %v4037_v28  ;;  %1000 = vmatpush2.bf16.msra.mxu1 %v4039_v29  ;;  %v147_v28 = vld [vmem:[#allocation3 + $0x150] sm:$0xff]  ;;  %v3980_v29 = vcombine.high %v156_v22, %v160_v24  ;;  %v220_v24 = vld [vmem:[#allocation3 + $0x398] sm:$0xff] }
  0x63   :  { %960 = vmatprep.subr.bf16.mxu0 %v4030_v30  ;;  %1001 = vmatprep.subr.bf16.mxu1 %v4032_v31  ;;  %v151_v30 = vld [vmem:[#allocation3 + $0x170] sm:$0xff]  ;;  %v148_v31 = vld [vmem:[#allocation3 + $0x158] sm:$0xff] }
  0x64   :  { %v3970_v33 = vcombine.high %v147_v28, %v151_v30  ;;  %v3972_v35 = vcombine.high %v148_v31, %v152_v32  ;;  %v3971_v40 = vcombine.low %v148_v31, %v152_v32  ;;  %v212_v32 = vld [vmem:[#allocation3 + $0x358] sm:$0xff] }
  0x66   :  { %961 = vmatpush2.bf16.msra.mxu0 %v4029_v36  ;;  %1002 = vmatpush2.bf16.msra.mxu1 %v4031_v37  ;;  %v143_v36 = vld [vmem:[#allocation3 + $0x130] sm:$0xff]  ;;  %v140_v37 = vld [vmem:[#allocation3 + $0x118] sm:$0xff] }
  0x67   :  { %962 = vmatprep.subr.bf16.mxu0 %v4022_v38  ;;  %1003 = vmatprep.subr.bf16.mxu1 %v4024_v39  ;;  %v144_v38 = vld [vmem:[#allocation3 + $0x138] sm:$0xff]  ;;  %v3969_v39 = vcombine.low %v147_v28, %v151_v30  ;;  %v3962_v41 = vcombine.high %v139_v34, %v143_v36  ;;  %v3961_v48 = vcombine.low %v139_v34, %v143_v36  ;;  %v211_v28 = vld [vmem:[#allocation3 + $0x350] sm:$0xff] }
  0x68   :  { %v3964_v43 = vcombine.high %v140_v37, %v144_v38  ;;  %v203_v34 = vld [vmem:[#allocation3 + $0x310] sm:$0xff] }
  0x6a   :  { %963 = vmatpush2.bf16.msra.mxu0 %v4021_v44  ;;  %1004 = vmatpush2.bf16.msra.mxu1 %v4023_v45  ;;  %v135_v44 = vld [vmem:[#allocation3 + $0xf0] sm:$0xff]  ;;  %v132_v45 = vld [vmem:[#allocation3 + $0xd8] sm:$0xff] }
  0x6b   :  { %964 = vmatprep.subr.bf16.mxu0 %v4014_v46  ;;  %1005 = vmatprep.subr.bf16.mxu1 %v4016_v49  ;;  %v136_v46 = vld [vmem:[#allocation3 + $0xf8] sm:$0xff]  ;;  %v3963_v49 = vcombine.low %v140_v37, %v144_v38  ;;  %v3954_v50 = vcombine.high %v131_v42, %v135_v44 }
  0x6c   :  { %v3955_v59 = vcombine.low %v132_v45, %v136_v46  ;;  %v204_v38 = vld [vmem:[#allocation3 + $0x318] sm:$0xff] }
  0x6e   :  { %965 = vmatpush2.bf16.msra.mxu0 %v4013_v53  ;;  %1006 = vmatpush2.bf16.msra.mxu1 %v4015_v54  ;;  %v124_v53 = vld [vmem:[#allocation3 + $0x98] sm:$0xff] }
  0x6f   :  { %966 = vmatprep.subr.bf16.mxu0 %v4006_v55  ;;  %1007 = vmatprep.subr.bf16.mxu1 %v4008_v58  ;;  %v128_v54 = vld [vmem:[#allocation3 + $0xb8] sm:$0xff]  ;;  %v3953_v55 = vcombine.low %v131_v42, %v135_v44  ;;  %v119_v58 = vld [vmem:[#allocation3 + $0x70] sm:$0xff] }
  0x70   :  { %v3947_v5 = vcombine.low %v124_v53, %v128_v54  ;;  %v3938_v6 = vcombine.high %v115_v56, %v119_v58  ;;  %v195_v42 = vld [vmem:[#allocation3 + $0x2d0] sm:$0xff] }
  0x72   :  { %967 = vmatpush2.bf16.msra.mxu0 %v4005_v63  ;;  %1008 = vmatpush2.bf16.msra.mxu1 %v4007_v0  ;;  %v120_v63 = vld [vmem:[#allocation3 + $0x78] sm:$0xff]  ;;  %v3948_v0 = vcombine.high %v124_v53, %v128_v54 }
  0x73   :  { %968 = vmatprep.subr.bf16.mxu0 %v3998_v1  ;;  %1009 = vmatprep.subr.bf16.mxu1 %v4000_v3  ;;  %v3945_v1 = vcombine.low %v123_v51, %v127_v52  ;;  %v111_v3 = vld [vmem:[#allocation3 + $0x30] sm:$0xff]  ;;  %v3939_v13 = vcombine.low %v116_v62, %v120_v63  ;;  %v188_v54 = vld [vmem:[#allocation3 + $0x298] sm:$0xff] }
  0x74   :  { %v3930_v14 = vcombine.high %v107_v2, %v111_v3  ;;  %v187_v51 = vld [vmem:[#allocation3 + $0x290] sm:$0xff] }
  0x76   :  { %969 = vmatpush2.bf16.msra.mxu0 %v3997_v8  ;;  %1010 = vmatpush2.bf16.msra.mxu1 %v3999_v9  ;;  %v112_v8 = vld [vmem:[#allocation3 + $0x38] sm:$0xff]  ;;  %v3940_v9 = vcombine.high %v116_v62, %v120_v63 }
  0x77   :  { %970 = vmatprep.subr.bf16.mxu0 %v3990_v10  ;;  %1011 = vmatprep.subr.bf16.mxu1 %v3992_v12  ;;  %v3937_v10 = vcombine.low %v115_v56, %v119_v58  ;;  %v231_v12 = vld [vmem:[#allocation3 + $0x3f0] sm:$0xff]  ;;  %v3931_v21 = vcombine.low %v108_v7, %v112_v8 }
  0x78   :  { %v4050_v22 = vcombine.high %v227_v11, %v231_v12 }
  0x7a   :  { %971 = vmatpush2.bf16.msra.mxu0 %v3989_v16  ;;  %1012 = vmatpush2.bf16.msra.mxu1 %v3991_v17  ;;  %v232_v16 = vld [vmem:[#allocation3 + $0x3f8] sm:$0xff]  ;;  %v3932_v17 = vcombine.high %v108_v7, %v112_v8 }
  0x7b   :  { %1022 = vmatprep.subr.bf16.mxu0 %v3986_v18  ;;  %1063 = vmatprep.subr.bf16.mxu1 %v3988_v20  ;;  %v3929_v18 = vcombine.low %v107_v2, %v111_v3  ;;  %v223_v20 = vld [vmem:[#allocation3 + $0x3b0] sm:$0xff]  ;;  %v4051_v30 = vcombine.low %v228_v15, %v232_v16 }
  0x7c   :  { %v4042_v31 = vcombine.high %v219_v19, %v223_v20 }
  0x7d   :  { %973 = vmatmul.mubr.bf16.vlgmr.msra.gmra.mxu0 %v5176_v23  ;;  %1014 = vmatmul.mubr.bf16.vlgmr.msra.gmra.mxu1 %v5176_v23 }
  0x7e   :  { %1023 = vmatpush1.bf16.msra.mxu0 %v3985_v25  ;;  %1064 = vmatpush1.bf16.msra.mxu1 %v3987_v26  ;;  %v224_v25 = vld [vmem:[#allocation3 + $0x3b8] sm:$0xff]  ;;  %v4052_v26 = vcombine.high %v228_v15, %v232_v16  ;;  %v4437_v16 = vld [vmem:[#allocation5 + $0xe4] ss:$16 sps:$4 sm:$0xff]  }
  0x7f   :  { %1024 = vmatprep.subr.bf16.mxu0 %v3978_v27  ;;  %1065 = vmatprep.subr.bf16.mxu1 %v3980_v29  ;;  %v4049_v27 = vcombine.low %v227_v11, %v231_v12  ;;  %v215_v29 = vld [vmem:[#allocation3 + $0x370] sm:$0xff]  ;;  %v4043_v36 = vcombine.low %v220_v24, %v224_v25 }
  0x80   :  { %1054 = vmatprep.mubr.bf16.mxu0 %v5170_v4  ;;  %1095 = vmatprep.mubr.bf16.mxu1 %v5170_v4  ;;  %v3956_v4 = vcombine.high %v132_v45, %v136_v46  ;;  %v4034_v37 = vcombine.high %v211_v28, %v215_v29  ;;  %v196_v46 = vld [vmem:[#allocation3 + $0x2d8] sm:$0xff] }
  0x82   :  { %1025 = vmatpush1.bf16.msra.mxu0 %v3977_v57  ;;  %1066 = vmatpush1.bf16.msra.mxu1 %v3979_v60  ;;  %v216_v57 = vld [vmem:[#allocation3 + $0x378] sm:$0xff]  ;;  %v4044_v60 = vcombine.high %v220_v24, %v224_v25  ;;  %v4446_v24 = vld [vmem:[#allocation5 + $0x2c4] ss:$16 sps:$4 sm:$0xff]   ;;  %v4441_v25 = vld [vmem:[#allocation5 + $0xc0] ss:$16 sps:$4 sm:$0xff]  }
  0x83   :  { %1026 = vmatprep.subr.bf16.mxu0 %v3970_v33  ;;  %1067 = vmatprep.subr.bf16.mxu1 %v3972_v35  ;;  %v4041_v33 = vcombine.low %v219_v19, %v223_v20  ;;  %v207_v35 = vld [vmem:[#allocation3 + $0x330] sm:$0xff]  ;;  %v4035_v44 = vcombine.low %v212_v32, %v216_v57 }
  0x84   :  { %v4026_v45 = vcombine.high %v203_v34, %v207_v35  ;;  %v4435_v20 = vld [vmem:[#allocation5 + $0xe0] ss:$16 sps:$4 sm:$0xff]  }
  0x86   :  { %1027 = vmatpush1.bf16.msra.mxu0 %v3969_v39  ;;  %1068 = vmatpush1.bf16.msra.mxu1 %v3971_v40  ;;  %v208_v39 = vld [vmem:[#allocation3 + $0x338] sm:$0xff]  ;;  %v4036_v40 = vcombine.high %v212_v32, %v216_v57  ;;  %v4458_v32 = vld [vmem:[#allocation5 + $0x284] ss:$16 sps:$4 sm:$0xff]   ;;  %v4453_v57 = vld [vmem:[#allocation5 + $0x80] ss:$16 sps:$4 sm:$0xff]  }
  0x87   :  { %1028 = vmatprep.subr.bf16.mxu0 %v3962_v41  ;;  %1069 = vmatprep.subr.bf16.mxu1 %v3964_v43  ;;  %v4033_v41 = vcombine.low %v211_v28, %v215_v29  ;;  %v199_v43 = vld [vmem:[#allocation3 + $0x2f0] sm:$0xff]  ;;  %v4027_v52 = vcombine.low %v204_v38, %v208_v39 }
  0x88   :  { %v4018_v53 = vcombine.high %v195_v42, %v199_v43  ;;  %v4017_v58 = vcombine.low %v195_v42, %v199_v43  ;;  %v4452_v28 = vld [vmem:[#allocation5 + $0x2a4] ss:$16 sps:$4 sm:$0xff]   ;;  %v4447_v29 = vld [vmem:[#allocation5 + $0xa0] ss:$16 sps:$4 sm:$0xff]  }
  0x89   :  { %v4471_v42 = vld [vmem:[#allocation5 + $0x20] ss:$16 sps:$4 sm:$0xff]  }
  0x8a   :  { %1029 = vmatpush1.bf16.msra.mxu0 %v3961_v48  ;;  %1070 = vmatpush1.bf16.msra.mxu1 %v3963_v49  ;;  %v200_v48 = vld [vmem:[#allocation3 + $0x2f8] sm:$0xff]  ;;  %v4028_v49 = vcombine.high %v204_v38, %v208_v39  ;;  %v4465_v38 = vld [vmem:[#allocation5 + $0x40] ss:$16 sps:$4 sm:$0xff]  }
  0x8b   :  { %1030 = vmatprep.subr.bf16.mxu0 %v3954_v50  ;;  %1071 = vmatprep.subr.bf16.mxu1 %v3956_v4  ;;  %v4025_v50 = vcombine.low %v203_v34, %v207_v35  ;;  %v191_v4 = vld [vmem:[#allocation3 + $0x2b0] sm:$0xff]  ;;  %v4020_v56 = vcombine.high %v196_v46, %v200_v48  ;;  %v4019_v62 = vcombine.low %v196_v46, %v200_v48 }
  0x8c   :  { %v4010_v63 = vcombine.high %v187_v51, %v191_v4  ;;  %v4009_v3 = vcombine.low %v187_v51, %v191_v4  ;;  %v4459_v34 = vld [vmem:[#allocation5 + $0x60] ss:$16 sps:$4 sm:$0xff]  }
  0x8d   :  { %v4462_v35 = vld [vmem:[#allocation5 + $0x260] ss:$16 sps:$4 sm:$0xff]  }
  0x8e   :  { %1031 = vmatpush1.bf16.msra.mxu0 %v3953_v55  ;;  %1072 = vmatpush1.bf16.msra.mxu1 %v3955_v59  ;;  %v192_v55 = vld [vmem:[#allocation3 + $0x2b8] sm:$0xff]  ;;  %v179_v59 = vld [vmem:[#allocation3 + $0x250] sm:$0xff] }
  0x8f   :  { %1032 = vmatprep.subr.bf16.mxu0 %v3946_v61  ;;  %1073 = vmatprep.subr.bf16.mxu1 %v3948_v0  ;;  %v183_v61 = vld [vmem:[#allocation3 + $0x270] sm:$0xff]  ;;  %v180_v0 = vld [vmem:[#allocation3 + $0x258] sm:$0xff]  ;;  %v4012_v2 = vcombine.high %v188_v54, %v192_v55  ;;  %v4011_v7 = vcombine.low %v188_v54, %v192_v55 }
  0x90   :  { %v4002_v8 = vcombine.high %v179_v59, %v183_v61  ;;  %v4001_v12 = vcombine.low %v179_v59, %v183_v61  ;;  %v4468_v39 = vld [vmem:[#allocation5 + $0x240] ss:$16 sps:$4 sm:$0xff]  }
  0x91   :  { %v4474_v43 = vld [vmem:[#allocation5 + $0x220] ss:$16 sps:$4 sm:$0xff]  }
  0x92   :  { %1033 = vmatpush1.bf16.msra.mxu0 %v3945_v1  ;;  %1074 = vmatpush1.bf16.msra.mxu1 %v3947_v5  ;;  %v184_v1 = vld [vmem:[#allocation3 + $0x278] sm:$0xff]  ;;  %v171_v5 = vld [vmem:[#allocation3 + $0x210] sm:$0xff] }
  0x93   :  { %1034 = vmatprep.subr.bf16.mxu0 %v3938_v6  ;;  %1075 = vmatprep.subr.bf16.mxu1 %v3940_v9  ;;  %v175_v6 = vld [vmem:[#allocation3 + $0x230] sm:$0xff]  ;;  %v172_v9 = vld [vmem:[#allocation3 + $0x218] sm:$0xff]  ;;  %v4004_v11 = vcombine.high %v180_v0, %v184_v1 }
  0x94   :  { %v4477_v46 = vld [vmem:[#allocation5] ss:$16 sps:$4 sm:$0xff]  }
  0x95   :  { %v4480_v48 = vld [vmem:[#allocation5 + $0x200] ss:$16 sps:$4 sm:$0xff]  }
  0x96   :  { %1035 = vmatpush1.bf16.msra.mxu0 %v3937_v10  ;;  %1076 = vmatpush1.bf16.msra.mxu1 %v3939_v13  ;;  %v176_v10 = vld [vmem:[#allocation3 + $0x238] sm:$0xff]  ;;  %v4003_v13 = vcombine.low %v180_v0, %v184_v1  ;;  %v4483_v51 = vld [vmem:[#allocation5 + $0x1e0] ss:$16 sps:$4 sm:$0xff]  }
  0x97   :  { %1036 = vmatprep.subr.bf16.mxu0 %v3930_v14  ;;  %1077 = vmatprep.subr.bf16.mxu1 %v3932_v17  ;;  %v3994_v14 = vcombine.high %v171_v5, %v175_v6  ;;  %v3996_v15 = vcombine.high %v172_v9, %v176_v10  ;;  %v3993_v17 = vcombine.low %v171_v5, %v175_v6  ;;  %v4486_v4 = vld [vmem:[#allocation5 + $0x3e0] ss:$16 sps:$4 sm:$0xff]  }
  0x98   :  { %v3995_v19 = vcombine.low %v172_v9, %v176_v10  ;;  %v4489_v54 = vld [vmem:[#allocation5 + $0x1c0] ss:$16 sps:$4 sm:$0xff]  }
  0x99   :  { %v4492_v55 = vld [vmem:[#allocation5 + $0x3c0] ss:$16 sps:$4 sm:$0xff]  }
  0x9a   :  { %1037 = vmatpush1.bf16.msra.mxu0 %v3929_v18  ;;  %1078 = vmatpush1.bf16.msra.mxu1 %v3931_v21  ;;  %v4440_v18 = vld [vmem:[#allocation5 + $0x2e4] ss:$16 sps:$4 sm:$0xff]   ;;  %v4438_v21 = vld [vmem:[#allocation5 + $0x2e0] ss:$16 sps:$4 sm:$0xff]  }
  0x9b   :  { %1038 = vmatprep.subr.bf16.mxu0 %v4050_v22  ;;  %1079 = vmatprep.subr.bf16.mxu1 %v4052_v26  ;;  %v4443_v22 = vld [vmem:[#allocation5 + $0xc4] ss:$16 sps:$4 sm:$0xff]   ;;  %v4444_v26 = vld [vmem:[#allocation5 + $0x2c0] ss:$16 sps:$4 sm:$0xff]  }
  0x9c   :  { %v4495_v59 = vld [vmem:[#allocation5 + $0x1a0] ss:$16 sps:$4 sm:$0xff]  }
  0x9d   :  { %v4498_v61 = vld [vmem:[#allocation5 + $0x3a0] ss:$16 sps:$4 sm:$0xff]  }
  0x9e   :  { %1039 = vmatpush2.bf16.msra.mxu0 %v4049_v27  ;;  %1080 = vmatpush2.bf16.msra.mxu1 %v4051_v30  ;;  %v4449_v27 = vld [vmem:[#allocation5 + $0xa4] ss:$16 sps:$4 sm:$0xff]   ;;  %v4450_v30 = vld [vmem:[#allocation5 + $0x2a0] ss:$16 sps:$4 sm:$0xff]  }
  0x9f   :  { %1040 = vmatprep.subr.bf16.mxu0 %v4042_v31  ;;  %1081 = vmatprep.subr.bf16.mxu1 %v4044_v60  ;;  %v4455_v31 = vld [vmem:[#allocation5 + $0x84] ss:$16 sps:$4 sm:$0xff]   ;;  %v4456_v60 = vld [vmem:[#allocation5 + $0x280] ss:$16 sps:$4 sm:$0xff]  }
  0xa0   :  { %v4501_v0 = vld [vmem:[#allocation5 + $0x180] ss:$16 sps:$4 sm:$0xff]  }
  0xa1   :  { %v4504_v1 = vld [vmem:[#allocation5 + $0x380] ss:$16 sps:$4 sm:$0xff]  }
  0xa2   :  { %1041 = vmatpush2.bf16.msra.mxu0 %v4041_v33  ;;  %1082 = vmatpush2.bf16.msra.mxu1 %v4043_v36  ;;  %v4464_v33 = vld [vmem:[#allocation5 + $0x264] ss:$16 sps:$4 sm:$0xff]   ;;  %v4507_v5 = vld [vmem:[#allocation5 + $0x160] ss:$16 sps:$4 sm:$0xff]  }
  0xa3   :  { %1042 = vmatprep.subr.bf16.mxu0 %v4034_v37  ;;  %1083 = vmatprep.subr.bf16.mxu1 %v4036_v40  ;;  %v4467_v36 = vld [vmem:[#allocation5 + $0x44] ss:$16 sps:$4 sm:$0xff]   ;;  %v4510_v6 = vld [vmem:[#allocation5 + $0x360] ss:$16 sps:$4 sm:$0xff]  }
  0xa4   :  { %v4470_v37 = vld [vmem:[#allocation5 + $0x244] ss:$16 sps:$4 sm:$0xff]   ;;  %v4513_v9 = vld [vmem:[#allocation5 + $0x140] ss:$16 sps:$4 sm:$0xff]  }
  0xa5   :  { %v4473_v40 = vld [vmem:[#allocation5 + $0x24] ss:$16 sps:$4 sm:$0xff]   ;;  %v4516_v10 = vld [vmem:[#allocation5 + $0x340] ss:$16 sps:$4 sm:$0xff]  }
  0xa6   :  { %1043 = vmatpush2.bf16.msra.mxu0 %v4033_v41  ;;  %1084 = vmatpush2.bf16.msra.mxu1 %v4035_v44  ;;  %v4476_v41 = vld [vmem:[#allocation5 + $0x224] ss:$16 sps:$4 sm:$0xff]  }
  0xa7   :  { %1044 = vmatprep.subr.bf16.mxu0 %v4026_v45  ;;  %1085 = vmatprep.subr.bf16.mxu1 %v4028_v49  ;;  %v4479_v44 = vld [vmem:[#allocation5 + $0x4] ss:$16 sps:$4 sm:$0xff]  }
  0xa8   :  { %v4482_v45 = vld [vmem:[#allocation5 + $0x204] ss:$16 sps:$4 sm:$0xff]  }
  0xa9   :  { %v4485_v49 = vld [vmem:[#allocation5 + $0x1e4] ss:$16 sps:$4 sm:$0xff]  }
  0xaa   :  { %1045 = vmatpush2.bf16.msra.mxu0 %v4025_v50  ;;  %1086 = vmatpush2.bf16.msra.mxu1 %v4027_v52  ;;  %v4488_v50 = vld [vmem:[#allocation5 + $0x3e4] ss:$16 sps:$4 sm:$0xff]  }
  0xab   :  { %1046 = vmatprep.subr.bf16.mxu0 %v4018_v53  ;;  %1087 = vmatprep.subr.bf16.mxu1 %v4020_v56  ;;  %v4491_v52 = vld [vmem:[#allocation5 + $0x1c4] ss:$16 sps:$4 sm:$0xff]  }
  0xac   :  { %v4494_v53 = vld [vmem:[#allocation5 + $0x3c4] ss:$16 sps:$4 sm:$0xff]  }
  0xad   :  { %v4497_v56 = vld [vmem:[#allocation5 + $0x1a4] ss:$16 sps:$4 sm:$0xff]  }
  0xae   :  { %1047 = vmatpush2.bf16.msra.mxu0 %v4017_v58  ;;  %1088 = vmatpush2.bf16.msra.mxu1 %v4019_v62  ;;  %v4500_v58 = vld [vmem:[#allocation5 + $0x3a4] ss:$16 sps:$4 sm:$0xff]  }
  0xaf   :  { %1048 = vmatprep.subr.bf16.mxu0 %v4010_v63  ;;  %1089 = vmatprep.subr.bf16.mxu1 %v4012_v2  ;;  %v4503_v62 = vld [vmem:[#allocation5 + $0x184] ss:$16 sps:$4 sm:$0xff]  }
  0xb0   :  { %v4506_v63 = vld [vmem:[#allocation5 + $0x384] ss:$16 sps:$4 sm:$0xff]  }
  0xb1   :  { %v4509_v2 = vld [vmem:[#allocation5 + $0x164] ss:$16 sps:$4 sm:$0xff]  }
  0xb2   :  { %1049 = vmatpush2.bf16.msra.mxu0 %v4009_v3  ;;  %1090 = vmatpush2.bf16.msra.mxu1 %v4011_v7  ;;  %v4512_v3 = vld [vmem:[#allocation5 + $0x364] ss:$16 sps:$4 sm:$0xff]  }
  0xb3   :  { %1050 = vmatprep.subr.bf16.mxu0 %v4002_v8  ;;  %1091 = vmatprep.subr.bf16.mxu1 %v4004_v11  ;;  %v4515_v7 = vld [vmem:[#allocation5 + $0x144] ss:$16 sps:$4 sm:$0xff]  }
  0xb4   :  { %v4518_v8 = vld [vmem:[#allocation5 + $0x344] ss:$16 sps:$4 sm:$0xff]  }
  0xb5   :  { %v4521_v11 = vld [vmem:[#allocation5 + $0x124] ss:$16 sps:$4 sm:$0xff]  }
  0xb6   :  { %1051 = vmatpush2.bf16.msra.mxu0 %v4001_v12  ;;  %1092 = vmatpush2.bf16.msra.mxu1 %v4003_v13  ;;  %v4524_v12 = vld [vmem:[#allocation5 + $0x324] ss:$16 sps:$4 sm:$0xff]   ;;  %v4519_v13 = vld [vmem:[#allocation5 + $0x120] ss:$16 sps:$4 sm:$0xff]  }
  0xb7   :  { %1052 = vmatprep.subr.bf16.mxu0 %v3994_v14  ;;  %1093 = vmatprep.subr.bf16.mxu1 %v3996_v15  ;;  %v4522_v14 = vld [vmem:[#allocation5 + $0x320] ss:$16 sps:$4 sm:$0xff]   ;;  %v4527_v15 = vld [vmem:[#allocation5 + $0x104] ss:$16 sps:$4 sm:$0xff]  }
  0xba   :  { %1053 = vmatpush2.bf16.msra.mxu0 %v3993_v17  ;;  %1094 = vmatpush2.bf16.msra.mxu1 %v3995_v19  ;;  %v4525_v17 = vld [vmem:[#allocation5 + $0x100] ss:$16 sps:$4 sm:$0xff]   ;;  %v4533_v19 = vld [vmem:[#allocation5 + $0x4e4] ss:$16 sps:$4 sm:$0xff]  }
  0xbb   :  { %2694 = vmatprep.subr.bf16.mxu0 %v4437_v16  ;;  %2735 = vmatprep.subr.bf16.mxu1 %v4440_v18  ;;  %v4530_v16 = vld [vmem:[#allocation5 + $0x304] ss:$16 sps:$4 sm:$0xff]   ;;  %v4528_v18 = vld [vmem:[#allocation5 + $0x300] ss:$16 sps:$4 sm:$0xff]  }
  0xbd   :  { %1055 = vmatmul.mubr.bf16.vlgmr.msra.gmra.mxu0 %v5176_v23  ;;  %1096 = vmatmul.mubr.bf16.vlgmr.msra.gmra.mxu1 %v5176_v23  ;;  %v4461_v23 = vld [vmem:[#allocation5 + $0x64] ss:$16 sps:$4 sm:$0xff]  }
  0xbe   :  { %2695 = vmatpush1.bf16.msra.mxu0 %v4435_v20  ;;  %2736 = vmatpush1.bf16.msra.mxu1 %v4438_v21  ;;  %v4536_v20 = vld [vmem:[#allocation5 + $0x6e4] ss:$16 sps:$4 sm:$0xff]   ;;  %v5185_v21 = vsub.s32 0, %v5157_v47 }
  0xbf   :  { %2696 = vmatprep.subr.bf16.mxu0 %v4443_v22  ;;  %2737 = vmatprep.subr.bf16.mxu1 %v4446_v24  ;;  %v5190_v22 = vld [vmem:[%s5310_s2] sm:$0xff]  ;;  %v245_v24 = vsub.s32 2, %v5157_v47 }
  0xc2   :  { %2697 = vmatpush1.bf16.msra.mxu0 %v4441_v25  ;;  %2738 = vmatpush1.bf16.msra.mxu1 %v4444_v26  ;;  %v5194_v25 = vsub.s32 1, %v5157_v47  ;;  %v249_v26 = vsub.s32 3, %v5157_v47 }
  0xc3   :  { %2698 = vmatprep.subr.bf16.mxu0 %v4449_v27  ;;  %2739 = vmatprep.subr.bf16.mxu1 %v4452_v28  ;;  %v238_v27 = vrot.slane %v5190_v22, %v5185_v21  ;;  %v246_v28 = vrot.slane %v5190_v22, %v245_v24 }
  0xc6   :  { %2699 = vmatpush1.bf16.msra.mxu0 %v4447_v29  ;;  %2740 = vmatpush1.bf16.msra.mxu1 %v4450_v30  ;;  %v242_v29 = vrot.slane %v5190_v22, %v5194_v25 }
  0xc7   :  { %2700 = vmatprep.subr.bf16.mxu0 %v4455_v31  ;;  %2741 = vmatprep.subr.bf16.mxu1 %v4458_v32  ;;  %v250_v31 = vrot.slane %v5190_v22, %v249_v26 }
  0xca   :  { %2701 = vmatpush1.bf16.msra.mxu0 %v4453_v57  ;;  %2742 = vmatpush1.bf16.msra.mxu1 %v4456_v60 }
  0xcb   :  { %2702 = vmatprep.subr.bf16.mxu0 %v4461_v23  ;;  %2743 = vmatprep.subr.bf16.mxu1 %v4464_v33 }
  0xce   :  { %2703 = vmatpush1.bf16.msra.mxu0 %v4459_v34  ;;  %2744 = vmatpush1.bf16.msra.mxu1 %v4462_v35 }
  0xcf   :  { %2704 = vmatprep.subr.bf16.mxu0 %v4467_v36  ;;  %2745 = vmatprep.subr.bf16.mxu1 %v4470_v37 }
  0xd2   :  { %2705 = vmatpush1.bf16.msra.mxu0 %v4465_v38  ;;  %2746 = vmatpush1.bf16.msra.mxu1 %v4468_v39 }
  0xd3   :  { %2706 = vmatprep.subr.bf16.mxu0 %v4473_v40  ;;  %2747 = vmatprep.subr.bf16.mxu1 %v4476_v41 }
  0xd6   :  { %2707 = vmatpush1.bf16.msra.mxu0 %v4471_v42  ;;  %2748 = vmatpush1.bf16.msra.mxu1 %v4474_v43 }
  0xd7   :  { %2708 = vmatprep.subr.bf16.mxu0 %v4479_v44  ;;  %2749 = vmatprep.subr.bf16.mxu1 %v4482_v45 }
  0xda   :  { %2709 = vmatpush1.bf16.msra.mxu0 %v4477_v46  ;;  %2750 = vmatpush1.bf16.msra.mxu1 %v4480_v48 }
  0xdb   :  { %2710 = vmatprep.subr.bf16.mxu0 %v4485_v49  ;;  %2751 = vmatprep.subr.bf16.mxu1 %v4488_v50  ;;  %v4531_v50 = vld [vmem:[#allocation5 + $0x4e0] ss:$16 sps:$4 sm:$0xff]  }
  0xde   :  { %2711 = vmatpush2.bf16.msra.mxu0 %v4483_v51  ;;  %2752 = vmatpush2.bf16.msra.mxu1 %v4486_v4 }
  0xdf   :  { %2712 = vmatprep.subr.bf16.mxu0 %v4491_v52  ;;  %2753 = vmatprep.subr.bf16.mxu1 %v4494_v53  ;;  %v4534_v52 = vld [vmem:[#allocation5 + $0x6e0] ss:$16 sps:$4 sm:$0xff]   ;;  %v4539_v53 = vld [vmem:[#allocation5 + $0x4c4] ss:$16 sps:$4 sm:$0xff]  }
  0xe2   :  { %2713 = vmatpush2.bf16.msra.mxu0 %v4489_v54  ;;  %2754 = vmatpush2.bf16.msra.mxu1 %v4492_v55  ;;  %v4542_v55 = vld [vmem:[#allocation5 + $0x6c4] ss:$16 sps:$4 sm:$0xff]  }
  0xe3   :  { %2714 = vmatprep.subr.bf16.mxu0 %v4497_v56  ;;  %2755 = vmatprep.subr.bf16.mxu1 %v4500_v58  ;;  %v4537_v56 = vld [vmem:[#allocation5 + $0x4c0] ss:$16 sps:$4 sm:$0xff]  }
  0xe4   :  { %v4540_v58 = vld [vmem:[#allocation5 + $0x6c0] ss:$16 sps:$4 sm:$0xff]  }
  0xe6   :  { %2715 = vmatpush2.bf16.msra.mxu0 %v4495_v59  ;;  %2756 = vmatpush2.bf16.msra.mxu1 %v4498_v61  ;;  %v4545_v59 = vld [vmem:[#allocation5 + $0x4a4] ss:$16 sps:$4 sm:$0xff]  }
  0xe7   :  { %2716 = vmatprep.subr.bf16.mxu0 %v4503_v62  ;;  %2757 = vmatprep.subr.bf16.mxu1 %v4506_v63  ;;  %v4548_v61 = vld [vmem:[#allocation5 + $0x6a4] ss:$16 sps:$4 sm:$0xff]   ;;  %v4543_v62 = vld [vmem:[#allocation5 + $0x4a0] ss:$16 sps:$4 sm:$0xff]  }
  0xe8   :  { %v4546_v63 = vld [vmem:[#allocation5 + $0x6a0] ss:$16 sps:$4 sm:$0xff]  }
  0xea   :  { %2717 = vmatpush2.bf16.msra.mxu0 %v4501_v0  ;;  %2758 = vmatpush2.bf16.msra.mxu1 %v4504_v1  ;;  %v4551_v0 = vld [vmem:[#allocation5 + $0x484] ss:$16 sps:$4 sm:$0xff]  }
  0xeb   :  { %2718 = vmatprep.subr.bf16.mxu0 %v4509_v2  ;;  %2759 = vmatprep.subr.bf16.mxu1 %v4512_v3  ;;  %v4554_v1 = vld [vmem:[#allocation5 + $0x684] ss:$16 sps:$4 sm:$0xff]   ;;  %v4549_v2 = vld [vmem:[#allocation5 + $0x480] ss:$16 sps:$4 sm:$0xff]  }
  0xec   :  { %v4552_v3 = vld [vmem:[#allocation5 + $0x680] ss:$16 sps:$4 sm:$0xff]  }
  0xee   :  { %2719 = vmatpush2.bf16.msra.mxu0 %v4507_v5  ;;  %2760 = vmatpush2.bf16.msra.mxu1 %v4510_v6  ;;  %v4557_v5 = vld [vmem:[#allocation5 + $0x464] ss:$16 sps:$4 sm:$0xff]  }
  0xef   :  { %2720 = vmatprep.subr.bf16.mxu0 %v4515_v7  ;;  %2761 = vmatprep.subr.bf16.mxu1 %v4518_v8  ;;  %v4560_v6 = vld [vmem:[#allocation5 + $0x664] ss:$16 sps:$4 sm:$0xff]   ;;  %v4555_v7 = vld [vmem:[#allocation5 + $0x460] ss:$16 sps:$4 sm:$0xff]  }
  0xf0   :  { %v4558_v8 = vld [vmem:[#allocation5 + $0x660] ss:$16 sps:$4 sm:$0xff]  }
  0xf2   :  { %2721 = vmatpush2.bf16.msra.mxu0 %v4513_v9  ;;  %2762 = vmatpush2.bf16.msra.mxu1 %v4516_v10  ;;  %v4563_v9 = vld [vmem:[#allocation5 + $0x444] ss:$16 sps:$4 sm:$0xff]  }
  0xf3   :  { %2722 = vmatprep.subr.bf16.mxu0 %v4521_v11  ;;  %2763 = vmatprep.subr.bf16.mxu1 %v4524_v12  ;;  %v4566_v10 = vld [vmem:[#allocation5 + $0x644] ss:$16 sps:$4 sm:$0xff]   ;;  %v4561_v11 = vld [vmem:[#allocation5 + $0x440] ss:$16 sps:$4 sm:$0xff]  }
  0xf4   :  { %v4564_v12 = vld [vmem:[#allocation5 + $0x640] ss:$16 sps:$4 sm:$0xff]  }
  0xf6   :  { %2723 = vmatpush2.bf16.msra.mxu0 %v4519_v13  ;;  %2764 = vmatpush2.bf16.msra.mxu1 %v4522_v14  ;;  %v4569_v13 = vld [vmem:[#allocation5 + $0x424] ss:$16 sps:$4 sm:$0xff]  }
  0xf7   :  { %2724 = vmatprep.subr.bf16.mxu0 %v4527_v15  ;;  %2765 = vmatprep.subr.bf16.mxu1 %v4530_v16  ;;  %v4572_v14 = vld [vmem:[#allocation5 + $0x624] ss:$16 sps:$4 sm:$0xff]   ;;  %v4567_v15 = vld [vmem:[#allocation5 + $0x420] ss:$16 sps:$4 sm:$0xff]  }
  0xf8   :  { %v4570_v16 = vld [vmem:[#allocation5 + $0x620] ss:$16 sps:$4 sm:$0xff]  }
  0xfa   :  { %2725 = vmatpush2.bf16.msra.mxu0 %v4525_v17  ;;  %2766 = vmatpush2.bf16.msra.mxu1 %v4528_v18  ;;  %v4575_v17 = vld [vmem:[#allocation5 + $0x404] ss:$16 sps:$4 sm:$0xff]  }
  0xfb   :  { %2776 = vmatprep.subr.bf16.mxu0 %v4533_v19  ;;  %2817 = vmatprep.subr.bf16.mxu1 %v4536_v20  ;;  %v4578_v18 = vld [vmem:[#allocation5 + $0x604] ss:$16 sps:$4 sm:$0xff]   ;;  %v4573_v19 = vld [vmem:[#allocation5 + $0x400] ss:$16 sps:$4 sm:$0xff]  }
  0xfc   :  { %v4576_v20 = vld [vmem:[#allocation5 + $0x600] ss:$16 sps:$4 sm:$0xff]  }
 0x13d   :  { %v974_v30 = vpop.f32.mrf.mxu0  ;;  %v1015_v57 = vpop.f32.mrf.mxu1 }
 0x13e   :  { %v975_v32 = vadd.f32 %v974_v30, %v238_v27  ;;  %v1016_v60 = vadd.f32 %v1015_v57, %v246_v28  ;;  %v4581_v27 = vld [vmem:[#allocation5 + $0x5e4] ss:$16 sps:$4 sm:$0xff]   ;;  %v4582_v30 = vld [vmem:[#allocation5 + $0x7e0] ss:$16 sps:$4 sm:$0xff]  }
 0x13f   :  { %v976_v23 = vpop.f32.mrf.mxu0  ;;  %v1017_v35 = vpop.f32.mrf.mxu1  ;;  %v4584_v28 = vld [vmem:[#allocation5 + $0x7e4] ss:$16 sps:$4 sm:$0xff]   ;;  %v4585_v57 = vld [vmem:[#allocation5 + $0x5c0] ss:$16 sps:$4 sm:$0xff]  }
 0x140   :  { %vm1104_vm0 = vcmp.ge.f32.partialorder %v975_v32, 0.0  ;;  %v1112_v33 = vmul.f32 0.01, %v975_v32  ;;  %v977_v34 = vadd.f32 %v976_v23, %v242_v29  ;;  %vm1106_vm1 = vcmp.ge.f32.partialorder %v1016_v60, 0.0  ;;  %v4579_v29 = vld [vmem:[#allocation5 + $0x5e0] ss:$16 sps:$4 sm:$0xff]  }
 0x141   :  { %v1114_v36 = vmul.f32 0.01, %v1016_v60  ;;  %v1018_v37 = vadd.f32 %v1017_v35, %v250_v31  ;;  %v978_v38 = vpop.f32.mrf.mxu0  ;;  %v1019_v40 = vpop.f32.mrf.mxu1  ;;  %v4587_v31 = vld [vmem:[#allocation5 + $0x5c4] ss:$16 sps:$4 sm:$0xff]   ;;  %v4594_v35 = vld [vmem:[#allocation5 + $0x7a0] ss:$16 sps:$4 sm:$0xff]  }
 0x142   :  { %vm1105_vm2 = vcmp.ge.f32.partialorder %v977_v34, 0.0  ;;  %v1113_v39 = vmul.f32 0.01, %v977_v34  ;;  %v1120_v41 = vsel %vm1104_vm0, %v975_v32, %v1112_v33  ;;  %v4590_v32 = vld [vmem:[#allocation5 + $0x7c4] ss:$16 sps:$4 sm:$0xff]   ;;  %vm3789_vm0 = vcmask 1041408  }
 0x143   :  { %vm1107_vm3 = vcmp.ge.f32.partialorder %v1018_v37, 0.0  ;;  %v1115_v42 = vmul.f32 0.01, %v1018_v37  ;;  %v979_v43 = vpop.f32.mrf.mxu0  ;;  %v1122_v44 = vsel %vm1106_vm1, %v1016_v60, %v1114_v36  ;;  %v1020_v45 = vpop.f32.mrf.mxu1  ;;  %v5209_v51 = vpack.c.bf16 %v1120_v41, %v1120_v41  ;;  %v4588_v60 = vld [vmem:[#allocation5 + $0x7c0] ss:$16 sps:$4 sm:$0xff]  }
 0x144   :  { %v1121_v46 = vsel %vm1105_vm2, %v977_v34, %v1113_v39  ;;  %v5213_v54 = vpack.c.bf16 %v1122_v44, %v1122_v44  ;;  %v4593_v23 = vld [vmem:[#allocation5 + $0x5a4] ss:$16 sps:$4 sm:$0xff]   ;;  %v4591_v34 = vld [vmem:[#allocation5 + $0x5a0] ss:$16 sps:$4 sm:$0xff]   ;;  %v253_v45 = vsub.s32 4, %v5157_v47  ;;  %vm3827_vm2 = vcmask 91136  }
 0x145   :  { %v5207_v48 = vpack.c.bf16 %v1121_v46, %v1121_v46  ;;  %v1123_v49 = vsel %vm1107_vm3, %v1018_v37, %v1115_v42  ;;  %v4596_v33 = vld [vmem:[#allocation5 + $0x7a4] ss:$16 sps:$4 sm:$0xff]   ;;  %v4597_v38 = vld [vmem:[#allocation5 + $0x580] ss:$16 sps:$4 sm:$0xff]   ;;  %vm3840_vm3 = vcmask 1043456  }
 0x146   :  { %v5211_v4 = vpack.c.bf16 %v1123_v49, %v1123_v49  ;;  %v4599_v36 = vld [vmem:[#allocation5 + $0x584] ss:$16 sps:$4 sm:$0xff]   ;;  %v4600_v39 = vld [vmem:[#allocation5 + $0x780] ss:$16 sps:$4 sm:$0xff]   ;;  %v261_v49 = vsub.s32 6, %v5157_v47 }
 0x147   :  { %2726 = vmatprep.mubr.bf16.mxu0 %v5207_v48  ;;  %v4602_v37 = vld [vmem:[#allocation5 + $0x784] ss:$16 sps:$4 sm:$0xff]   ;;  %v4603_v42 = vld [vmem:[#allocation5 + $0x560] ss:$16 sps:$4 sm:$0xff]  }
 0x148   :  { %2767 = vmatprep.mubr.bf16.mxu1 %v5211_v4  ;;  %2727 = vmatmul.mubr.bf16.vlgmr.msra.gmra.mxu0 %v5209_v51  ;;  %v4605_v40 = vld [vmem:[#allocation5 + $0x564] ss:$16 sps:$4 sm:$0xff]   ;;  %v4606_v43 = vld [vmem:[#allocation5 + $0x760] ss:$16 sps:$4 sm:$0xff]  }
 0x149   :  { %2768 = vmatmul.mubr.bf16.vlgmr.msra.gmra.mxu1 %v5213_v54  ;;  %2777 = vmatpush1.bf16.msra.mxu0 %v4531_v50  ;;  %v4608_v41 = vld [vmem:[#allocation5 + $0x764] ss:$16 sps:$4 sm:$0xff]   ;;  %v257_v50 = vsub.s32 5, %v5157_v47 }
 0x14a   :  { %2818 = vmatpush1.bf16.msra.mxu1 %v4534_v52  ;;  %2778 = vmatprep.subr.bf16.mxu0 %v4539_v53  ;;  %v4611_v44 = vld [vmem:[#allocation5 + $0x544] ss:$16 sps:$4 sm:$0xff]   ;;  %v4609_v52 = vld [vmem:[#allocation5 + $0x540] ss:$16 sps:$4 sm:$0xff]   ;;  %v265_v53 = vsub.s32 7, %v5157_v47 }
 0x14b   :  { %2819 = vmatprep.subr.bf16.mxu1 %v4542_v55  ;;  %v4614_v46 = vld [vmem:[#allocation5 + $0x744] ss:$16 sps:$4 sm:$0xff]   ;;  %v4612_v55 = vld [vmem:[#allocation5 + $0x740] ss:$16 sps:$4 sm:$0xff]  }
 0x14c   :  { %v4951_v47 = vld [vmem:[#allocation8 + $0xb0] ss:$8 sps:$4 sm:$0xff]  }
 0x14d   :  { %2779 = vmatpush1.bf16.msra.mxu0 %v4537_v56  ;;  %v254_v56 = vrot.slane %v5190_v22, %v253_v45  ;;  %v4647_v45 = vld [vmem:[#allocation5 + $0x8c] ss:$16 sps:$4 sm:$0xff]  }
 0x14e   :  { %2820 = vmatpush1.bf16.msra.mxu1 %v4540_v58  ;;  %2780 = vmatprep.subr.bf16.mxu0 %v4545_v59  ;;  %v4617_v58 = vld [vmem:[#allocation5 + $0x524] ss:$16 sps:$4 sm:$0xff]   ;;  %v262_v59 = vrot.slane %v5190_v22, %v261_v49  ;;  %v4645_v49 = vld [vmem:[#allocation5 + $0x88] ss:$16 sps:$4 sm:$0xff]  }
 0x14f   :  { %2821 = vmatprep.subr.bf16.mxu1 %v4548_v61  ;;  %v4620_v61 = vld [vmem:[#allocation5 + $0x724] ss:$16 sps:$4 sm:$0xff]  }
 0x151   :  { %2781 = vmatpush1.bf16.msra.mxu0 %v4543_v62  ;;  %v258_v62 = vrot.slane %v5190_v22, %v257_v50  ;;  %v4653_v50 = vld [vmem:[#allocation5 + $0x6c] ss:$16 sps:$4 sm:$0xff]  }
 0x152   :  { %2822 = vmatpush1.bf16.msra.mxu1 %v4546_v63  ;;  %2782 = vmatprep.subr.bf16.mxu0 %v4551_v0  ;;  %v266_v0 = vrot.slane %v5190_v22, %v265_v53  ;;  %v4654_v53 = vld [vmem:[#allocation5 + $0x268] ss:$16 sps:$4 sm:$0xff]  }
 0x153   :  { %2823 = vmatprep.subr.bf16.mxu1 %v4554_v1  ;;  %v4615_v1 = vld [vmem:[#allocation5 + $0x520] ss:$16 sps:$4 sm:$0xff]  }
 0x155   :  { %2783 = vmatpush1.bf16.msra.mxu0 %v4549_v2 }
 0x156   :  { %2824 = vmatpush1.bf16.msra.mxu1 %v4552_v3  ;;  %2784 = vmatprep.subr.bf16.mxu0 %v4557_v5  ;;  %v4618_v5 = vld [vmem:[#allocation5 + $0x720] ss:$16 sps:$4 sm:$0xff]  }
 0x157   :  { %2825 = vmatprep.subr.bf16.mxu1 %v4560_v6  ;;  %v4623_v6 = vld [vmem:[#allocation5 + $0x504] ss:$16 sps:$4 sm:$0xff]  }
 0x159   :  { %2785 = vmatpush1.bf16.msra.mxu0 %v4555_v7 }
 0x15a   :  { %2826 = vmatpush1.bf16.msra.mxu1 %v4558_v8  ;;  %2786 = vmatprep.subr.bf16.mxu0 %v4563_v9  ;;  %v4626_v9 = vld [vmem:[#allocation5 + $0x704] ss:$16 sps:$4 sm:$0xff]  }
 0x15b   :  { %2827 = vmatprep.subr.bf16.mxu1 %v4566_v10 }
 0x15d   :  { %2787 = vmatpush1.bf16.msra.mxu0 %v4561_v11 }
 0x15e   :  { %2828 = vmatpush1.bf16.msra.mxu1 %v4564_v12  ;;  %2788 = vmatprep.subr.bf16.mxu0 %v4569_v13  ;;  %v4621_v13 = vld [vmem:[#allocation5 + $0x500] ss:$16 sps:$4 sm:$0xff]  }
 0x15f   :  { %2829 = vmatprep.subr.bf16.mxu1 %v4572_v14 }
 0x161   :  { %2789 = vmatpush1.bf16.msra.mxu0 %v4567_v15 }
 0x162   :  { %2830 = vmatpush1.bf16.msra.mxu1 %v4570_v16  ;;  %2790 = vmatprep.subr.bf16.mxu0 %v4575_v17  ;;  %v4624_v16 = vld [vmem:[#allocation5 + $0x700] ss:$16 sps:$4 sm:$0xff]  }
 0x163   :  { %2831 = vmatprep.subr.bf16.mxu1 %v4578_v18 }
 0x165   :  { %2791 = vmatpush1.bf16.msra.mxu0 %v4573_v19  ;;  %v4629_v19 = vld [vmem:[#allocation5 + $0xec] ss:$16 sps:$4 sm:$0xff]  }
 0x166   :  { %2832 = vmatpush1.bf16.msra.mxu1 %v4576_v20  ;;  %2792 = vmatprep.subr.bf16.mxu0 %v4581_v27 }
 0x167   :  { %2833 = vmatprep.subr.bf16.mxu1 %v4584_v28 }
 0x169   :  { %2793 = vmatpush2.bf16.msra.mxu0 %v4579_v29  ;;  %v4632_v29 = vld [vmem:[#allocation5 + $0x2ec] ss:$16 sps:$4 sm:$0xff]  }
 0x16a   :  { %2834 = vmatpush2.bf16.msra.mxu1 %v4582_v30  ;;  %2794 = vmatprep.subr.bf16.mxu0 %v4587_v31 }
 0x16b   :  { %2835 = vmatprep.subr.bf16.mxu1 %v4590_v32 }
 0x16d   :  { %2795 = vmatpush2.bf16.msra.mxu0 %v4585_v57 }
 0x16e   :  { %2836 = vmatpush2.bf16.msra.mxu1 %v4588_v60  ;;  %2796 = vmatprep.subr.bf16.mxu0 %v4593_v23  ;;  %v4627_v23 = vld [vmem:[#allocation5 + $0xe8] ss:$16 sps:$4 sm:$0xff]  }
 0x16f   :  { %2837 = vmatprep.subr.bf16.mxu1 %v4596_v33 }
 0x171   :  { %2797 = vmatpush2.bf16.msra.mxu0 %v4591_v34 }
 0x172   :  { %2838 = vmatpush2.bf16.msra.mxu1 %v4594_v35  ;;  %2798 = vmatprep.subr.bf16.mxu0 %v4599_v36  ;;  %v4630_v35 = vld [vmem:[#allocation5 + $0x2e8] ss:$16 sps:$4 sm:$0xff]  }
 0x173   :  { %2839 = vmatprep.subr.bf16.mxu1 %v4602_v37  ;;  %v4635_v37 = vld [vmem:[#allocation5 + $0xcc] ss:$16 sps:$4 sm:$0xff]  }
 0x175   :  { %2799 = vmatpush2.bf16.msra.mxu0 %v4597_v38  ;;  %v4638_v38 = vld [vmem:[#allocation5 + $0x2cc] ss:$16 sps:$4 sm:$0xff]  }
 0x176   :  { %2840 = vmatpush2.bf16.msra.mxu1 %v4600_v39  ;;  %2800 = vmatprep.subr.bf16.mxu0 %v4605_v40  ;;  %v4633_v39 = vld [vmem:[#allocation5 + $0xc8] ss:$16 sps:$4 sm:$0xff]  }
 0x177   :  { %2841 = vmatprep.subr.bf16.mxu1 %v4608_v41  ;;  %v4636_v40 = vld [vmem:[#allocation5 + $0x2c8] ss:$16 sps:$4 sm:$0xff]   ;;  %v4641_v41 = vld [vmem:[#allocation5 + $0xac] ss:$16 sps:$4 sm:$0xff]  }
 0x179   :  { %2801 = vmatpush2.bf16.msra.mxu0 %v4603_v42  ;;  %v4644_v42 = vld [vmem:[#allocation5 + $0x2ac] ss:$16 sps:$4 sm:$0xff]  }
 0x17a   :  { %2842 = vmatpush2.bf16.msra.mxu1 %v4606_v43  ;;  %2802 = vmatprep.subr.bf16.mxu0 %v4611_v44  ;;  %v4639_v43 = vld [vmem:[#allocation5 + $0xa8] ss:$16 sps:$4 sm:$0xff]  }
 0x17b   :  { %2843 = vmatprep.subr.bf16.mxu1 %v4614_v46  ;;  %v4642_v44 = vld [vmem:[#allocation5 + $0x2a8] ss:$16 sps:$4 sm:$0xff]   ;;  %v4650_v46 = vld [vmem:[#allocation5 + $0x28c] ss:$16 sps:$4 sm:$0xff]  }
 0x17d   :  { %2803 = vmatpush2.bf16.msra.mxu0 %v4609_v52  ;;  %v1056_v63 = vpop.f32.mrf.mxu0  ;;  %v1097_v3 = vpop.f32.mrf.mxu1  ;;  %v4656_v52 = vld [vmem:[#allocation5 + $0x26c] ss:$16 sps:$4 sm:$0xff]  }
 0x17e   :  { %2844 = vmatpush2.bf16.msra.mxu1 %v4612_v55  ;;  %v1057_v2 = vadd.f32 %v1056_v63, %v254_v56  ;;  %2804 = vmatprep.subr.bf16.mxu0 %v4617_v58  ;;  %v1098_v7 = vadd.f32 %v1097_v3, %v262_v59  ;;  %v4659_v55 = vld [vmem:[#allocation5 + $0x4c] ss:$16 sps:$4 sm:$0xff]   ;;  %v4657_v58 = vld [vmem:[#allocation5 + $0x48] ss:$16 sps:$4 sm:$0xff]  }
 0x17f   :  { %v1058_v8 = vpop.f32.mrf.mxu0  ;;  %2845 = vmatprep.subr.bf16.mxu1 %v4620_v61  ;;  %v1099_v12 = vpop.f32.mrf.mxu1  ;;  %v4662_v56 = vld [vmem:[#allocation5 + $0x24c] ss:$16 sps:$4 sm:$0xff]   ;;  %v4660_v59 = vld [vmem:[#allocation5 + $0x248] ss:$16 sps:$4 sm:$0xff]  }
 0x180   :  { %vm1108_vm4 = vcmp.ge.f32.partialorder %v1057_v2, 0.0  ;;  %v1116_v10 = vmul.f32 0.01, %v1057_v2  ;;  %v1059_v11 = vadd.f32 %v1058_v8, %v258_v62  ;;  %vm1110_vm5 = vcmp.ge.f32.partialorder %v1098_v7, 0.0  ;;  %v4665_v61 = vld [vmem:[#allocation5 + $0x2c] ss:$16 sps:$4 sm:$0xff]  }
 0x181   :  { %v1118_v14 = vmul.f32 0.01, %v1098_v7  ;;  %v1100_v15 = vadd.f32 %v1099_v12, %v266_v0  ;;  %2805 = vmatpush2.bf16.msra.mxu0 %v4615_v1  ;;  %v1060_v22 = vpop.f32.mrf.mxu0  ;;  %v1101_v18 = vpop.f32.mrf.mxu1  ;;  %v4668_v62 = vld [vmem:[#allocation5 + $0x22c] ss:$16 sps:$4 sm:$0xff]   ;;  %v4663_v63 = vld [vmem:[#allocation5 + $0x28] ss:$16 sps:$4 sm:$0xff]  }
 0x182   :  { %vm1109_vm6 = vcmp.ge.f32.partialorder %v1059_v11, 0.0  ;;  %v1117_v17 = vmul.f32 0.01, %v1059_v11  ;;  %2846 = vmatpush2.bf16.msra.mxu1 %v4618_v5  ;;  %2806 = vmatprep.subr.bf16.mxu0 %v4623_v6  ;;  %v1124_v20 = vsel %vm1108_vm4, %v1057_v2, %v1116_v10  ;;  %v4666_v0 = vld [vmem:[#allocation5 + $0x228] ss:$16 sps:$4 sm:$0xff]   ;;  %vm5066_vm4 = vmmov 0  }
 0x183   :  { %vm1111_vm7 = vcmp.ge.f32.partialorder %v1100_v15, 0.0  ;;  %v1119_v27 = vmul.f32 0.01, %v1100_v15  ;;  %v1061_v28 = vpop.f32.mrf.mxu0  ;;  %2847 = vmatprep.subr.bf16.mxu1 %v4626_v9  ;;  %v1126_v30 = vsel %vm1110_vm5, %v1098_v7, %v1118_v14  ;;  %v1102_v31 = vpop.f32.mrf.mxu1  ;;  %v5231_v33 = vpack.c.bf16 %v1124_v20, %v1124_v20  ;;  %v4671_v1 = vld [vmem:[#allocation5 + $0xc] ss:$16 sps:$4 sm:$0xff]  }
 0x184   :  { %v1125_v32 = vsel %vm1109_vm6, %v1059_v11, %v1117_v17  ;;  %v5235_v36 = vpack.c.bf16 %v1126_v30, %v1126_v30  ;;  %v4674_v2 = vld [vmem:[#allocation5 + $0x20c] ss:$16 sps:$4 sm:$0xff]   ;;  %v4669_v3 = vld [vmem:[#allocation5 + $0x8] ss:$16 sps:$4 sm:$0xff]   ;;  %vm3836_vm5 = vcmask 97280  }
 0x185   :  { %2807 = vmatpush2.bf16.msra.mxu0 %v4621_v13  ;;  %v5229_v57 = vpack.c.bf16 %v1125_v32, %v1125_v32  ;;  %v1127_v60 = vsel %vm1111_vm7, %v1100_v15, %v1119_v27  ;;  %v4672_v5 = vld [vmem:[#allocation5 + $0x208] ss:$16 sps:$4 sm:$0xff]   ;;  %v4677_v6 = vld [vmem:[#allocation5 + $0x1ec] ss:$16 sps:$4 sm:$0xff]  }
 0x186   :  { %2848 = vmatpush2.bf16.msra.mxu1 %v4624_v16  ;;  %v5233_v34 = vpack.c.bf16 %v1127_v60, %v1127_v60  ;;  %2858 = vmatprep.subr.bf16.mxu0 %v4629_v19  ;;  %v4680_v7 = vld [vmem:[#allocation5 + $0x3ec] ss:$16 sps:$4 sm:$0xff]   ;;  %v4675_v8 = vld [vmem:[#allocation5 + $0x1e8] ss:$16 sps:$4 sm:$0xff]  }
 0x187   :  { %2808 = vmatprep.mubr.bf16.mxu0 %v5229_v57  ;;  %2899 = vmatprep.subr.bf16.mxu1 %v4632_v29  ;;  %v4678_v9 = vld [vmem:[#allocation5 + $0x3e8] ss:$16 sps:$4 sm:$0xff]   ;;  %v4683_v10 = vld [vmem:[#allocation5 + $0x1cc] ss:$16 sps:$4 sm:$0xff]  }
 0x188   :  { %2849 = vmatprep.mubr.bf16.mxu1 %v5233_v34  ;;  %2809 = vmatmul.mubr.bf16.vlgmr.msra.gmra.mxu0 %v5231_v33  ;;  %v4686_v11 = vld [vmem:[#allocation5 + $0x3cc] ss:$16 sps:$4 sm:$0xff]   ;;  %v4681_v12 = vld [vmem:[#allocation5 + $0x1c8] ss:$16 sps:$4 sm:$0xff]  }
 0x189   :  { %2850 = vmatmul.mubr.bf16.vlgmr.msra.gmra.mxu1 %v5235_v36  ;;  %2859 = vmatpush1.bf16.msra.mxu0 %v4627_v23  ;;  %v4684_v13 = vld [vmem:[#allocation5 + $0x3c8] ss:$16 sps:$4 sm:$0xff]   ;;  %v4689_v14 = vld [vmem:[#allocation5 + $0x1ac] ss:$16 sps:$4 sm:$0xff]  }
 0x18a   :  { %2900 = vmatpush1.bf16.msra.mxu1 %v4630_v35  ;;  %2890 = vmatprep.mubr.bf16.mxu0 %v5207_v48  ;;  %v4648_v48 = vld [vmem:[#allocation5 + $0x288] ss:$16 sps:$4 sm:$0xff]   ;;  %v4692_v15 = vld [vmem:[#allocation5 + $0x3ac] ss:$16 sps:$4 sm:$0xff]  }
 0x18b   :  { %2931 = vmatprep.mubr.bf16.mxu1 %v5211_v4  ;;  %2860 = vmatprep.subr.bf16.mxu0 %v4635_v37  ;;  %v4651_v4 = vld [vmem:[#allocation5 + $0x68] ss:$16 sps:$4 sm:$0xff]   ;;  %v4695_v17 = vld [vmem:[#allocation5 + $0x18c] ss:$16 sps:$4 sm:$0xff]  }
 0x18c   :  { %2901 = vmatprep.subr.bf16.mxu1 %v4638_v38  ;;  %v4687_v22 = vld [vmem:[#allocation5 + $0x1a8] ss:$16 sps:$4 sm:$0xff]   ;;  %v4698_v18 = vld [vmem:[#allocation5 + $0x38c] ss:$16 sps:$4 sm:$0xff]  }
 0x18d   :  { %2861 = vmatpush1.bf16.msra.mxu0 %v4633_v39  ;;  %v4690_v16 = vld [vmem:[#allocation5 + $0x3a8] ss:$16 sps:$4 sm:$0xff]   ;;  %v4701_v27 = vld [vmem:[#allocation5 + $0x16c] ss:$16 sps:$4 sm:$0xff]  }
 0x18e   :  { %2902 = vmatpush1.bf16.msra.mxu1 %v4636_v40  ;;  %2862 = vmatprep.subr.bf16.mxu0 %v4641_v41  ;;  %v4693_v19 = vld [vmem:[#allocation5 + $0x188] ss:$16 sps:$4 sm:$0xff]   ;;  %v4704_v28 = vld [vmem:[#allocation5 + $0x36c] ss:$16 sps:$4 sm:$0xff]  }
 0x18f   :  { %2903 = vmatprep.subr.bf16.mxu1 %v4644_v42  ;;  %v4696_v20 = vld [vmem:[#allocation5 + $0x388] ss:$16 sps:$4 sm:$0xff]   ;;  %v4707_v31 = vld [vmem:[#allocation5 + $0x14c] ss:$16 sps:$4 sm:$0xff]  }
 0x190   :  { %v4699_v29 = vld [vmem:[#allocation5 + $0x168] ss:$16 sps:$4 sm:$0xff]   ;;  %v4710_v32 = vld [vmem:[#allocation5 + $0x34c] ss:$16 sps:$4 sm:$0xff]  }
 0x191   :  { %2863 = vmatpush1.bf16.msra.mxu0 %v4639_v43  ;;  %v4702_v30 = vld [vmem:[#allocation5 + $0x368] ss:$16 sps:$4 sm:$0xff]   ;;  %v4713_v35 = vld [vmem:[#allocation5 + $0x12c] ss:$16 sps:$4 sm:$0xff]  }
 0x192   :  { %2904 = vmatpush1.bf16.msra.mxu1 %v4642_v44  ;;  %2864 = vmatprep.subr.bf16.mxu0 %v4647_v45  ;;  %v4705_v60 = vld [vmem:[#allocation5 + $0x148] ss:$16 sps:$4 sm:$0xff]   ;;  %v4716_v37 = vld [vmem:[#allocation5 + $0x32c] ss:$16 sps:$4 sm:$0xff]  }
 0x193   :  { %2905 = vmatprep.subr.bf16.mxu1 %v4650_v46  ;;  %v4708_v23 = vld [vmem:[#allocation5 + $0x348] ss:$16 sps:$4 sm:$0xff]   ;;  %v4719_v40 = vld [vmem:[#allocation5 + $0x10c] ss:$16 sps:$4 sm:$0xff]  }
 0x194   :  { %v4711_v38 = vld [vmem:[#allocation5 + $0x128] ss:$16 sps:$4 sm:$0xff]   ;;  %v4722_v41 = vld [vmem:[#allocation5 + $0x30c] ss:$16 sps:$4 sm:$0xff]  }
 0x195   :  { %2865 = vmatpush1.bf16.msra.mxu0 %v4645_v49  ;;  %v4714_v39 = vld [vmem:[#allocation5 + $0x328] ss:$16 sps:$4 sm:$0xff]   ;;  %v4725_v44 = vld [vmem:[#allocation5 + $0x4ec] ss:$16 sps:$4 sm:$0xff]  }
 0x196   :  { %2906 = vmatpush1.bf16.msra.mxu1 %v4648_v48  ;;  %2866 = vmatprep.subr.bf16.mxu0 %v4653_v50  ;;  %v4717_v42 = vld [vmem:[#allocation5 + $0x108] ss:$16 sps:$4 sm:$0xff]   ;;  %v4728_v45 = vld [vmem:[#allocation5 + $0x6ec] ss:$16 sps:$4 sm:$0xff]  }
 0x197   :  { %2907 = vmatprep.subr.bf16.mxu1 %v4656_v52  ;;  %v4720_v43 = vld [vmem:[#allocation5 + $0x308] ss:$16 sps:$4 sm:$0xff]   ;;  %v4731_v48 = vld [vmem:[#allocation5 + $0x4cc] ss:$16 sps:$4 sm:$0xff]  }
 0x198   :  { %v4723_v46 = vld [vmem:[#allocation5 + $0x4e8] ss:$16 sps:$4 sm:$0xff]   ;;  %v4734_v50 = vld [vmem:[#allocation5 + $0x6cc] ss:$16 sps:$4 sm:$0xff]  }
 0x199   :  { %2867 = vmatpush1.bf16.msra.mxu0 %v4651_v4  ;;  %v4726_v49 = vld [vmem:[#allocation5 + $0x6e8] ss:$16 sps:$4 sm:$0xff]  }
 0x19a   :  { %2908 = vmatpush1.bf16.msra.mxu1 %v4654_v53  ;;  %2868 = vmatprep.subr.bf16.mxu0 %v4659_v55  ;;  %v4729_v52 = vld [vmem:[#allocation5 + $0x4c8] ss:$16 sps:$4 sm:$0xff]   ;;  %v4737_v53 = vld [vmem:[#allocation5 + $0x4ac] ss:$16 sps:$4 sm:$0xff]  }
 0x19b   :  { %2909 = vmatprep.subr.bf16.mxu1 %v4662_v56  ;;  %v4732_v4 = vld [vmem:[#allocation5 + $0x6c8] ss:$16 sps:$4 sm:$0xff]   ;;  %v4740_v55 = vld [vmem:[#allocation5 + $0x6ac] ss:$16 sps:$4 sm:$0xff]  }
 0x19c   :  { %v4735_v56 = vld [vmem:[#allocation5 + $0x4a8] ss:$16 sps:$4 sm:$0xff]  }
 0x19d   :  { %2869 = vmatpush1.bf16.msra.mxu0 %v4657_v58  ;;  %v4743_v58 = vld [vmem:[#allocation5 + $0x48c] ss:$16 sps:$4 sm:$0xff]  }
 0x19e   :  { %2910 = vmatpush1.bf16.msra.mxu1 %v4660_v59  ;;  %2870 = vmatprep.subr.bf16.mxu0 %v4665_v61  ;;  %v4741_v59 = vld [vmem:[#allocation5 + $0x488] ss:$16 sps:$4 sm:$0xff]   ;;  %v4749_v61 = vld [vmem:[#allocation5 + $0x46c] ss:$16 sps:$4 sm:$0xff]  }
 0x19f   :  { %2911 = vmatprep.subr.bf16.mxu1 %v4668_v62  ;;  %v4752_v62 = vld [vmem:[#allocation5 + $0x66c] ss:$16 sps:$4 sm:$0xff]  }
 0x1a1   :  { %2871 = vmatpush1.bf16.msra.mxu0 %v4663_v63  ;;  %v4750_v63 = vld [vmem:[#allocation5 + $0x668] ss:$16 sps:$4 sm:$0xff]  }
 0x1a2   :  { %2912 = vmatpush1.bf16.msra.mxu1 %v4666_v0  ;;  %2872 = vmatprep.subr.bf16.mxu0 %v4671_v1  ;;  %v4755_v0 = vld [vmem:[#allocation5 + $0x44c] ss:$16 sps:$4 sm:$0xff]  }
 0x1a3   :  { %2913 = vmatprep.subr.bf16.mxu1 %v4674_v2  ;;  %v4758_v1 = vld [vmem:[#allocation5 + $0x64c] ss:$16 sps:$4 sm:$0xff]   ;;  %v4753_v2 = vld [vmem:[#allocation5 + $0x448] ss:$16 sps:$4 sm:$0xff]  }
 0x1a5   :  { %2873 = vmatpush1.bf16.msra.mxu0 %v4669_v3  ;;  %v4756_v3 = vld [vmem:[#allocation5 + $0x648] ss:$16 sps:$4 sm:$0xff]  }
 0x1a6   :  { %2914 = vmatpush1.bf16.msra.mxu1 %v4672_v5  ;;  %2874 = vmatprep.subr.bf16.mxu0 %v4677_v6  ;;  %v4761_v5 = vld [vmem:[#allocation5 + $0x42c] ss:$16 sps:$4 sm:$0xff]  }
 0x1a7   :  { %2915 = vmatprep.subr.bf16.mxu1 %v4680_v7  ;;  %v4764_v6 = vld [vmem:[#allocation5 + $0x62c] ss:$16 sps:$4 sm:$0xff]   ;;  %v4759_v7 = vld [vmem:[#allocation5 + $0x428] ss:$16 sps:$4 sm:$0xff]  }
 0x1a9   :  { %2875 = vmatpush2.bf16.msra.mxu0 %v4675_v8  ;;  %v4762_v8 = vld [vmem:[#allocation5 + $0x628] ss:$16 sps:$4 sm:$0xff]  }
 0x1aa   :  { %2916 = vmatpush2.bf16.msra.mxu1 %v4678_v9  ;;  %2876 = vmatprep.subr.bf16.mxu0 %v4683_v10  ;;  %v4767_v9 = vld [vmem:[#allocation5 + $0x40c] ss:$16 sps:$4 sm:$0xff]  }
 0x1ab   :  { %2917 = vmatprep.subr.bf16.mxu1 %v4686_v11  ;;  %v4770_v10 = vld [vmem:[#allocation5 + $0x60c] ss:$16 sps:$4 sm:$0xff]   ;;  %v4765_v11 = vld [vmem:[#allocation5 + $0x408] ss:$16 sps:$4 sm:$0xff]  }
 0x1ad   :  { %2877 = vmatpush2.bf16.msra.mxu0 %v4681_v12  ;;  %v4768_v12 = vld [vmem:[#allocation5 + $0x608] ss:$16 sps:$4 sm:$0xff]  }
 0x1ae   :  { %2918 = vmatpush2.bf16.msra.mxu1 %v4684_v13  ;;  %2878 = vmatprep.subr.bf16.mxu0 %v4689_v14  ;;  %v4773_v13 = vld [vmem:[#allocation5 + $0x5ec] ss:$16 sps:$4 sm:$0xff]  }
 0x1af   :  { %2919 = vmatprep.subr.bf16.mxu1 %v4692_v15  ;;  %v4776_v14 = vld [vmem:[#allocation5 + $0x7ec] ss:$16 sps:$4 sm:$0xff]   ;;  %v4771_v15 = vld [vmem:[#allocation5 + $0x5e8] ss:$16 sps:$4 sm:$0xff]  }
 0x1b1   :  { %2879 = vmatpush2.bf16.msra.mxu0 %v4687_v22  ;;  %v4774_v22 = vld [vmem:[#allocation5 + $0x7e8] ss:$16 sps:$4 sm:$0xff]  }
 0x1b2   :  { %2920 = vmatpush2.bf16.msra.mxu1 %v4690_v16  ;;  %2880 = vmatprep.subr.bf16.mxu0 %v4695_v17  ;;  %v4779_v16 = vld [vmem:[#allocation5 + $0x5cc] ss:$16 sps:$4 sm:$0xff]  }
 0x1b3   :  { %2921 = vmatprep.subr.bf16.mxu1 %v4698_v18  ;;  %v4782_v17 = vld [vmem:[#allocation5 + $0x7cc] ss:$16 sps:$4 sm:$0xff]   ;;  %v4777_v18 = vld [vmem:[#allocation5 + $0x5c8] ss:$16 sps:$4 sm:$0xff]  }
 0x1b5   :  { %2881 = vmatpush2.bf16.msra.mxu0 %v4693_v19  ;;  %v4780_v19 = vld [vmem:[#allocation5 + $0x7c8] ss:$16 sps:$4 sm:$0xff]  }
 0x1b6   :  { %2922 = vmatpush2.bf16.msra.mxu1 %v4696_v20  ;;  %2882 = vmatprep.subr.bf16.mxu0 %v4701_v27  ;;  %v4785_v20 = vld [vmem:[#allocation5 + $0x5ac] ss:$16 sps:$4 sm:$0xff]  }
 0x1b7   :  { %2923 = vmatprep.subr.bf16.mxu1 %v4704_v28  ;;  %v4788_v27 = vld [vmem:[#allocation5 + $0x7ac] ss:$16 sps:$4 sm:$0xff]   ;;  %v4783_v28 = vld [vmem:[#allocation5 + $0x5a8] ss:$16 sps:$4 sm:$0xff]  }
 0x1b9   :  { %2883 = vmatpush2.bf16.msra.mxu0 %v4699_v29  ;;  %v4786_v29 = vld [vmem:[#allocation5 + $0x7a8] ss:$16 sps:$4 sm:$0xff]  }
 0x1ba   :  { %2924 = vmatpush2.bf16.msra.mxu1 %v4702_v30  ;;  %2884 = vmatprep.subr.bf16.mxu0 %v4707_v31  ;;  %v4791_v30 = vld [vmem:[#allocation5 + $0x58c] ss:$16 sps:$4 sm:$0xff]  }
 0x1bb   :  { %2925 = vmatprep.subr.bf16.mxu1 %v4710_v32  ;;  %v4794_v31 = vld [vmem:[#allocation5 + $0x78c] ss:$16 sps:$4 sm:$0xff]   ;;  %v4789_v32 = vld [vmem:[#allocation5 + $0x588] ss:$16 sps:$4 sm:$0xff]  }
 0x1bd   :  { %2885 = vmatpush2.bf16.msra.mxu0 %v4705_v60  ;;  %v4792_v60 = vld [vmem:[#allocation5 + $0x788] ss:$16 sps:$4 sm:$0xff]  }
 0x1be   :  { %2926 = vmatpush2.bf16.msra.mxu1 %v4708_v23  ;;  %2886 = vmatprep.subr.bf16.mxu0 %v4713_v35  ;;  %v4797_v23 = vld [vmem:[#allocation5 + $0x56c] ss:$16 sps:$4 sm:$0xff]  }
 0x1bf   :  { %2927 = vmatprep.subr.bf16.mxu1 %v4716_v37  ;;  %v4800_v35 = vld [vmem:[#allocation5 + $0x76c] ss:$16 sps:$4 sm:$0xff]   ;;  %v4795_v37 = vld [vmem:[#allocation5 + $0x568] ss:$16 sps:$4 sm:$0xff]  }
 0x1c1   :  { %2887 = vmatpush2.bf16.msra.mxu0 %v4711_v38  ;;  %v4798_v38 = vld [vmem:[#allocation5 + $0x768] ss:$16 sps:$4 sm:$0xff]  }
 0x1c2   :  { %2928 = vmatpush2.bf16.msra.mxu1 %v4714_v39  ;;  %2888 = vmatprep.subr.bf16.mxu0 %v4719_v40  ;;  %v4803_v39 = vld [vmem:[#allocation5 + $0x54c] ss:$16 sps:$4 sm:$0xff]  }
 0x1c3   :  { %2929 = vmatprep.subr.bf16.mxu1 %v4722_v41  ;;  %v4806_v40 = vld [vmem:[#allocation5 + $0x74c] ss:$16 sps:$4 sm:$0xff]   ;;  %v4801_v41 = vld [vmem:[#allocation5 + $0x548] ss:$16 sps:$4 sm:$0xff]  }
 0x1c5   :  { %2889 = vmatpush2.bf16.msra.mxu0 %v4717_v42  ;;  %v4804_v42 = vld [vmem:[#allocation5 + $0x748] ss:$16 sps:$4 sm:$0xff]  }
 0x1c6   :  { %2930 = vmatpush2.bf16.msra.mxu1 %v4720_v43  ;;  %2940 = vmatprep.subr.bf16.mxu0 %v4725_v44  ;;  %v4809_v43 = vld [vmem:[#allocation5 + $0x52c] ss:$16 sps:$4 sm:$0xff]  }
 0x1c7   :  { %2981 = vmatprep.subr.bf16.mxu1 %v4728_v45  ;;  %v4812_v44 = vld [vmem:[#allocation5 + $0x72c] ss:$16 sps:$4 sm:$0xff]   ;;  %v4807_v45 = vld [vmem:[#allocation5 + $0x528] ss:$16 sps:$4 sm:$0xff]  }
 0x1c8   :  { %2891 = vmatmul.mubr.bf16.vlgmr.msra.gmra.mxu0 %v5209_v51  ;;  %v4738_v51 = vld [vmem:[#allocation5 + $0x6a8] ss:$16 sps:$4 sm:$0xff]  }
 0x1c9   :  { %2932 = vmatmul.mubr.bf16.vlgmr.msra.gmra.mxu1 %v5213_v54  ;;  %2941 = vmatpush1.bf16.msra.mxu0 %v4723_v46  ;;  %v4746_v54 = vld [vmem:[#allocation5 + $0x68c] ss:$16 sps:$4 sm:$0xff]   ;;  %v4810_v46 = vld [vmem:[#allocation5 + $0x728] ss:$16 sps:$4 sm:$0xff]  }
 0x1ca   :  { %2972 = vmatprep.mubr.bf16.mxu0 %v5229_v57  ;;  %2982 = vmatpush1.bf16.msra.mxu1 %v4726_v49  ;;  %v4744_v57 = vld [vmem:[#allocation5 + $0x688] ss:$16 sps:$4 sm:$0xff]   ;;  %v4815_v49 = vld [vmem:[#allocation5 + $0x50c] ss:$16 sps:$4 sm:$0xff]  }
 0x1cb   :  { %3013 = vmatprep.mubr.bf16.mxu1 %v5233_v34  ;;  %2942 = vmatprep.subr.bf16.mxu0 %v4731_v48  ;;  %v4747_v34 = vld [vmem:[#allocation5 + $0x468] ss:$16 sps:$4 sm:$0xff]   ;;  %v4818_v48 = vld [vmem:[#allocation5 + $0x70c] ss:$16 sps:$4 sm:$0xff]  }
 0x1cc   :  { %2983 = vmatprep.subr.bf16.mxu1 %v4734_v50  ;;  %v4813_v50 = vld [vmem:[#allocation5 + $0x508] ss:$16 sps:$4 sm:$0xff]  }
 0x1cd   :  { %2943 = vmatpush1.bf16.msra.mxu0 %v4729_v52  ;;  %v4816_v52 = vld [vmem:[#allocation5 + $0x708] ss:$16 sps:$4 sm:$0xff]  }
 0x1ce   :  { %2984 = vmatpush1.bf16.msra.mxu1 %v4732_v4  ;;  %2944 = vmatprep.subr.bf16.mxu0 %v4737_v53  ;;  %v4821_v4 = vld [vmem:[#allocation7 + $0x74] ss:$8 sps:$4 sm:$0xff]   ;;  %v4819_v53 = vld [vmem:[#allocation7 + $0x70] ss:$8 sps:$4 sm:$0xff]  }
 0x1cf   :  { %2985 = vmatprep.subr.bf16.mxu1 %v4740_v55  ;;  %v4824_v55 = vld [vmem:[#allocation7 + $0x64] ss:$8 sps:$4 sm:$0xff]  }
 0x1d1   :  { %2945 = vmatpush1.bf16.msra.mxu0 %v4735_v56 }
 0x1d2   :  { %2986 = vmatpush1.bf16.msra.mxu1 %v4738_v51  ;;  %2946 = vmatprep.subr.bf16.mxu0 %v4743_v58  ;;  %v4822_v58 = vld [vmem:[#allocation7 + $0x60] ss:$8 sps:$4 sm:$0xff]  }
 0x1d3   :  { %2987 = vmatprep.subr.bf16.mxu1 %v4746_v54 }
 0x1d5   :  { %2947 = vmatpush1.bf16.msra.mxu0 %v4741_v59  ;;  %v4827_v59 = vld [vmem:[#allocation7 + $0x54] ss:$8 sps:$4 sm:$0xff]  }
 0x1d6   :  { %2988 = vmatpush1.bf16.msra.mxu1 %v4744_v57  ;;  %2948 = vmatprep.subr.bf16.mxu0 %v4749_v61 }
 0x1d7   :  { %2989 = vmatprep.subr.bf16.mxu1 %v4752_v62 }
 0x1d9   :  { %2949 = vmatpush1.bf16.msra.mxu0 %v4747_v34  ;;  %v4825_v34 = vld [vmem:[#allocation7 + $0x50] ss:$8 sps:$4 sm:$0xff]  }
 0x1da   :  { %2990 = vmatpush1.bf16.msra.mxu1 %v4750_v63  ;;  %2950 = vmatprep.subr.bf16.mxu0 %v4755_v0 }
 0x1db   :  { %2991 = vmatprep.subr.bf16.mxu1 %v4758_v1  ;;  %v4867_v1 = vld [vmem:[#allocation7 + $0x170] ss:$8 sps:$4 sm:$0xff]  }
 0x1dd   :  { %2951 = vmatpush1.bf16.msra.mxu0 %v4753_v2  ;;  %v4872_v2 = vld [vmem:[#allocation7 + $0x164] ss:$8 sps:$4 sm:$0xff]  }
 0x1de   :  { %2992 = vmatpush1.bf16.msra.mxu1 %v4756_v3  ;;  %2952 = vmatprep.subr.bf16.mxu0 %v4761_v5  ;;  %v4828_v3 = vld [vmem:[#allocation7 + $0x40] ss:$8 sps:$4 sm:$0xff]   ;;  %v4833_v5 = vld [vmem:[#allocation7 + $0x34] ss:$8 sps:$4 sm:$0xff]  }
 0x1df   :  { %2993 = vmatprep.subr.bf16.mxu1 %v4764_v6  ;;  %v4870_v6 = vld [vmem:[#allocation7 + $0x160] ss:$8 sps:$4 sm:$0xff]  }
 0x1e1   :  { %2953 = vmatpush1.bf16.msra.mxu0 %v4759_v7  ;;  %v4875_v7 = vld [vmem:[#allocation7 + $0x154] ss:$8 sps:$4 sm:$0xff]  }
 0x1e2   :  { %2994 = vmatpush1.bf16.msra.mxu1 %v4762_v8  ;;  %2954 = vmatprep.subr.bf16.mxu0 %v4767_v9  ;;  %v4831_v8 = vld [vmem:[#allocation7 + $0x30] ss:$8 sps:$4 sm:$0xff]   ;;  %v4836_v9 = vld [vmem:[#allocation7 + $0x24] ss:$8 sps:$4 sm:$0xff]  }
 0x1e3   :  { %2995 = vmatprep.subr.bf16.mxu1 %v4770_v10  ;;  %v4873_v10 = vld [vmem:[#allocation7 + $0x150] ss:$8 sps:$4 sm:$0xff]  }
 0x1e5   :  { %2955 = vmatpush1.bf16.msra.mxu0 %v4765_v11  ;;  %v4878_v11 = vld [vmem:[#allocation7 + $0x144] ss:$8 sps:$4 sm:$0xff]  }
 0x1e6   :  { %2996 = vmatpush1.bf16.msra.mxu1 %v4768_v12  ;;  %2956 = vmatprep.subr.bf16.mxu0 %v4773_v13  ;;  %v4834_v12 = vld [vmem:[#allocation7 + $0x20] ss:$8 sps:$4 sm:$0xff]   ;;  %v4839_v13 = vld [vmem:[#allocation7 + $0x14] ss:$8 sps:$4 sm:$0xff]  }
 0x1e7   :  { %2997 = vmatprep.subr.bf16.mxu1 %v4776_v14  ;;  %v4876_v14 = vld [vmem:[#allocation7 + $0x140] ss:$8 sps:$4 sm:$0xff]  }
 0x1e9   :  { %2957 = vmatpush2.bf16.msra.mxu0 %v4771_v15  ;;  %v4881_v15 = vld [vmem:[#allocation7 + $0x134] ss:$8 sps:$4 sm:$0xff]  }
 0x1ea   :  { %2998 = vmatpush2.bf16.msra.mxu1 %v4774_v22  ;;  %2958 = vmatprep.subr.bf16.mxu0 %v4779_v16  ;;  %v4837_v22 = vld [vmem:[#allocation7 + $0x10] ss:$8 sps:$4 sm:$0xff]   ;;  %v4842_v16 = vld [vmem:[#allocation7 + $0x4] ss:$8 sps:$4 sm:$0xff]  }
 0x1eb   :  { %2999 = vmatprep.subr.bf16.mxu1 %v4782_v17  ;;  %v4879_v17 = vld [vmem:[#allocation7 + $0x130] ss:$8 sps:$4 sm:$0xff]  }
 0x1ed   :  { %2959 = vmatpush2.bf16.msra.mxu0 %v4777_v18  ;;  %v4884_v18 = vld [vmem:[#allocation7 + $0x124] ss:$8 sps:$4 sm:$0xff]  }
 0x1ee   :  { %3000 = vmatpush2.bf16.msra.mxu1 %v4780_v19  ;;  %2960 = vmatprep.subr.bf16.mxu0 %v4785_v20  ;;  %v4840_v19 = vld [vmem:[#allocation7] ss:$8 sps:$4 sm:$0xff]   ;;  %v4845_v20 = vld [vmem:[#allocation7 + $0xf4] ss:$8 sps:$4 sm:$0xff]  }
 0x1ef   :  { %3001 = vmatprep.subr.bf16.mxu1 %v4788_v27  ;;  %v4882_v27 = vld [vmem:[#allocation7 + $0x120] ss:$8 sps:$4 sm:$0xff]  }
 0x1f1   :  { %2961 = vmatpush2.bf16.msra.mxu0 %v4783_v28  ;;  %v4887_v28 = vld [vmem:[#allocation7 + $0x114] ss:$8 sps:$4 sm:$0xff]  }
 0x1f2   :  { %3002 = vmatpush2.bf16.msra.mxu1 %v4786_v29  ;;  %2962 = vmatprep.subr.bf16.mxu0 %v4791_v30  ;;  %v4843_v29 = vld [vmem:[#allocation7 + $0xf0] ss:$8 sps:$4 sm:$0xff]   ;;  %v4848_v30 = vld [vmem:[#allocation7 + $0xe4] ss:$8 sps:$4 sm:$0xff]  }
 0x1f3   :  { %3003 = vmatprep.subr.bf16.mxu1 %v4794_v31  ;;  %v4885_v31 = vld [vmem:[#allocation7 + $0x110] ss:$8 sps:$4 sm:$0xff]  }
 0x1f5   :  { %2963 = vmatpush2.bf16.msra.mxu0 %v4789_v32  ;;  %v4890_v32 = vld [vmem:[#allocation7 + $0x104] ss:$8 sps:$4 sm:$0xff]  }
 0x1f6   :  { %3004 = vmatpush2.bf16.msra.mxu1 %v4792_v60  ;;  %2964 = vmatprep.subr.bf16.mxu0 %v4797_v23  ;;  %v4846_v60 = vld [vmem:[#allocation7 + $0xe0] ss:$8 sps:$4 sm:$0xff]   ;;  %v4851_v23 = vld [vmem:[#allocation7 + $0xd4] ss:$8 sps:$4 sm:$0xff]  }
 0x1f7   :  { %3005 = vmatprep.subr.bf16.mxu1 %v4800_v35  ;;  %v4888_v35 = vld [vmem:[#allocation7 + $0x100] ss:$8 sps:$4 sm:$0xff]  }
 0x1f9   :  { %2965 = vmatpush2.bf16.msra.mxu0 %v4795_v37  ;;  %v4893_v37 = vld [vmem:[#allocation7 + $0x1f4] ss:$8 sps:$4 sm:$0xff]  }
 0x1fa   :  { %3006 = vmatpush2.bf16.msra.mxu1 %v4798_v38  ;;  %2966 = vmatprep.subr.bf16.mxu0 %v4803_v39  ;;  %v4849_v38 = vld [vmem:[#allocation7 + $0xd0] ss:$8 sps:$4 sm:$0xff]   ;;  %v4854_v39 = vld [vmem:[#allocation7 + $0xc4] ss:$8 sps:$4 sm:$0xff]  }
 0x1fb   :  { %3007 = vmatprep.subr.bf16.mxu1 %v4806_v40  ;;  %v4891_v40 = vld [vmem:[#allocation7 + $0x1f0] ss:$8 sps:$4 sm:$0xff]  }
 0x1fd   :  { %2967 = vmatpush2.bf16.msra.mxu0 %v4801_v41  ;;  %v4896_v41 = vld [vmem:[#allocation7 + $0x1e4] ss:$8 sps:$4 sm:$0xff]  }
 0x1fe   :  { %3008 = vmatpush2.bf16.msra.mxu1 %v4804_v42  ;;  %2968 = vmatprep.subr.bf16.mxu0 %v4809_v43  ;;  %v4852_v42 = vld [vmem:[#allocation7 + $0xc0] ss:$8 sps:$4 sm:$0xff]   ;;  %v4857_v43 = vld [vmem:[#allocation7 + $0xb4] ss:$8 sps:$4 sm:$0xff]  }
 0x1ff   :  { %3009 = vmatprep.subr.bf16.mxu1 %v4812_v44  ;;  %v4894_v44 = vld [vmem:[#allocation7 + $0x1e0] ss:$8 sps:$4 sm:$0xff]  }
 0x201   :  { %2969 = vmatpush2.bf16.msra.mxu0 %v4807_v45  ;;  %v4899_v45 = vld [vmem:[#allocation7 + $0x1d4] ss:$8 sps:$4 sm:$0xff]  }
 0x202   :  { %3010 = vmatpush2.bf16.msra.mxu1 %v4810_v46  ;;  %2970 = vmatprep.subr.bf16.mxu0 %v4815_v49  ;;  %v4855_v46 = vld [vmem:[#allocation7 + $0xb0] ss:$8 sps:$4 sm:$0xff]   ;;  %v4860_v49 = vld [vmem:[#allocation7 + $0xa4] ss:$8 sps:$4 sm:$0xff]  }
 0x203   :  { %3011 = vmatprep.subr.bf16.mxu1 %v4818_v48  ;;  %v4897_v48 = vld [vmem:[#allocation7 + $0x1d0] ss:$8 sps:$4 sm:$0xff]  }
 0x205   :  { %2971 = vmatpush2.bf16.msra.mxu0 %v4813_v50  ;;  %v4902_v50 = vld [vmem:[#allocation7 + $0x1c4] ss:$8 sps:$4 sm:$0xff]  }
 0x206   :  { %3012 = vmatpush2.bf16.msra.mxu1 %v4816_v52  ;;  %3434 = vmatprep.subr.bf16.mxu0 %v4821_v4  ;;  %v4858_v52 = vld [vmem:[#allocation7 + $0xa0] ss:$8 sps:$4 sm:$0xff]   ;;  %v4863_v4 = vld [vmem:[#allocation7 + $0x94] ss:$8 sps:$4 sm:$0xff]  }
 0x208   :  { %2973 = vmatmul.mubr.bf16.vlgmr.msra.gmra.mxu0 %v5231_v33  ;;  %v5248_v56 = vpop.f32.mrf.mxu0  ;;  %v4830_v33 = vld [vmem:[#allocation7 + $0x44] ss:$8 sps:$4 sm:$0xff]  }
 0x209   :  { %3014 = vmatmul.mubr.bf16.vlgmr.msra.gmra.mxu1 %v5235_v36  ;;  %v5251_v51 = vpop.f32.mrf.mxu1  ;;  %3435 = vmatpush1.bf16.msra.mxu0 %v4819_v53  ;;  %v4869_v36 = vld [vmem:[#allocation7 + $0x174] ss:$8 sps:$4 sm:$0xff]   ;;  %v4900_v53 = vld [vmem:[#allocation7 + $0x1c0] ss:$8 sps:$4 sm:$0xff]  }
 0x20a   :  { %v5253_v54 = vpop.f32.mrf.mxu0  ;;  %3436 = vmatprep.subr.bf16.mxu0 %v4824_v55  ;;  %3475 = vmatprep.subr.bf16.mxu1 %v4869_v36  ;;  %v4905_v55 = vld [vmem:[#allocation7 + $0x1b4] ss:$8 sps:$4 sm:$0xff]  }
 0x20b   :  { %v5255_v57 = vpop.f32.mrf.mxu1  ;;  %3476 = vmatpush1.bf16.msra.mxu1 %v4867_v1 }
 0x20c   :  { %v2732_v61 = vpop.f32.mrf.mxu0  ;;  %3477 = vmatprep.subr.bf16.mxu1 %v4872_v2 }
 0x20d   :  { %v2773_v62 = vpop.f32.mrf.mxu1  ;;  %3437 = vmatpush1.bf16.msra.mxu0 %v4822_v58  ;;  %v5260_v58 = vld [vmem:[%s5312_s4] sm:$0xf]  ;;  %v4866_v61 = vld [vmem:[#allocation7 + $0x84] ss:$8 sps:$4 sm:$0xff]  }
 0x20e   :  { %v2733_v63 = vpop.f32.mrf.mxu0  ;;  %3438 = vmatprep.subr.bf16.mxu0 %v4827_v59  ;;  %v4861_v59 = vld [vmem:[#allocation7 + $0x90] ss:$8 sps:$4 sm:$0xff]  }
 0x20f   :  { %v2774_v0 = vpop.f32.mrf.mxu1  ;;  %3478 = vmatpush1.bf16.msra.mxu1 %v4870_v6  ;;  %v4903_v62 = vld [vmem:[#allocation7 + $0x1b0] ss:$8 sps:$4 sm:$0xff]   ;;  %v1401_v63 = vrot.slane %v5260_v58, %v5194_v25 }
 0x210   :  { %3479 = vmatprep.subr.bf16.mxu1 %v4875_v7  ;;  %v4908_v7 = vld [vmem:[#allocation7 + $0x1a4] ss:$8 sps:$4 sm:$0xff]  }
 0x211   :  { %3439 = vmatpush1.bf16.msra.mxu0 %v4825_v34  ;;  %v1397_v34 = vrot.slane %v5260_v58, %v5185_v21  ;;  %v2731_v1 = vadd.f32 %v5253_v54, %v1401_v63  ;;  %v1405_v63 = vrot.slane %v5260_v58, %v245_v24 }
 0x212   :  { %3440 = vmatprep.subr.bf16.mxu0 %v4830_v33  ;;  %v4864_v33 = vld [vmem:[#allocation7 + $0x80] ss:$8 sps:$4 sm:$0xff]  }
 0x213   :  { %3480 = vmatpush1.bf16.msra.mxu1 %v4873_v10  ;;  %v2729_v0 = vadd.f32 %v5248_v56, %v1397_v34  ;;  %v4942_v34 = vld [vmem:[#allocation8 + $0xe0] ss:$8 sps:$4 sm:$0xff]  }
 0x214   :  { %3481 = vmatprep.subr.bf16.mxu1 %v4878_v11 }
 0x215   :  { %3441 = vmatpush1.bf16.msra.mxu0 %v4828_v3  ;;  %v2770_v36 = vadd.f32 %v5251_v51, %v2729_v0  ;;  %v2772_v3 = vadd.f32 %v5255_v57, %v2731_v1  ;;  %v1409_v0 = vrot.slane %v5260_v58, %v249_v26  ;;  %v4945_v1 = vld [vmem:[#allocation8 + $0xd0] ss:$8 sps:$4 sm:$0xff]  }
 0x216   :  { %3442 = vmatprep.subr.bf16.mxu0 %v4833_v5 }
 0x217   :  { %3482 = vmatpush1.bf16.msra.mxu1 %v4876_v14 }
 0x218   :  { %3483 = vmatprep.subr.bf16.mxu1 %v4881_v15  ;;  %v4911_v15 = vld [vmem:[#allocation7 + $0x194] ss:$8 sps:$4 sm:$0xff]  }
 0x219   :  { %3443 = vmatpush1.bf16.msra.mxu0 %v4831_v8 }
 0x21a   :  { %3444 = vmatprep.subr.bf16.mxu0 %v4836_v9  ;;  %v4906_v9 = vld [vmem:[#allocation7 + $0x1a0] ss:$8 sps:$4 sm:$0xff]  }
 0x21b   :  { %3484 = vmatpush1.bf16.msra.mxu1 %v4879_v17 }
 0x21c   :  { %3485 = vmatprep.subr.bf16.mxu1 %v4884_v18  ;;  %v4912_v18 = vld [vmem:[#allocation7 + $0x180] ss:$8 sps:$4 sm:$0xff]  }
 0x21d   :  { %3445 = vmatpush1.bf16.msra.mxu0 %v4834_v12 }
 0x21e   :  { %3446 = vmatprep.subr.bf16.mxu0 %v4839_v13 }
 0x21f   :  { %3486 = vmatpush1.bf16.msra.mxu1 %v4882_v27 }
 0x220   :  { %3487 = vmatprep.subr.bf16.mxu1 %v4887_v28 }
 0x221   :  { %3447 = vmatpush1.bf16.msra.mxu0 %v4837_v22  ;;  %v4909_v22 = vld [vmem:[#allocation7 + $0x190] ss:$8 sps:$4 sm:$0xff]  }
 0x222   :  { %3448 = vmatprep.subr.bf16.mxu0 %v4842_v16 }
 0x223   :  { %3488 = vmatpush1.bf16.msra.mxu1 %v4885_v31 }
 0x224   :  { %3489 = vmatprep.subr.bf16.mxu1 %v4890_v32 }
 0x225   :  { %3449 = vmatpush1.bf16.msra.mxu0 %v4840_v19  ;;  %v4914_v19 = vld [vmem:[#allocation7 + $0x184] ss:$8 sps:$4 sm:$0xff]  }
 0x226   :  { %3450 = vmatprep.subr.bf16.mxu0 %v4845_v20 }
 0x227   :  { %3490 = vmatpush1.bf16.msra.mxu1 %v4888_v35 }
 0x228   :  { %3491 = vmatprep.subr.bf16.mxu1 %v4893_v37 }
 0x229   :  { %3451 = vmatpush2.bf16.msra.mxu0 %v4843_v29 }
 0x22a   :  { %3452 = vmatprep.subr.bf16.mxu0 %v4848_v30 }
 0x22b   :  { %3492 = vmatpush2.bf16.msra.mxu1 %v4891_v40  ;;  %v4920_v40 = vld [vmem:[#allocation8 + $0x64] ss:$8 sps:$4 sm:$0xff]  }
 0x22c   :  { %3493 = vmatprep.subr.bf16.mxu1 %v4896_v41  ;;  %v4918_v41 = vld [vmem:[#allocation8 + $0x60] ss:$8 sps:$4 sm:$0xff]  }
 0x22d   :  { %3453 = vmatpush2.bf16.msra.mxu0 %v4846_v60 }
 0x22e   :  { %3454 = vmatprep.subr.bf16.mxu0 %v4851_v23 }
 0x22f   :  { %3494 = vmatpush2.bf16.msra.mxu1 %v4894_v44  ;;  %v4926_v44 = vld [vmem:[#allocation8 + $0x44] ss:$8 sps:$4 sm:$0xff]  }
 0x230   :  { %3495 = vmatprep.subr.bf16.mxu1 %v4899_v45  ;;  %v4924_v45 = vld [vmem:[#allocation8 + $0x40] ss:$8 sps:$4 sm:$0xff]  }
 0x231   :  { %3455 = vmatpush2.bf16.msra.mxu0 %v4849_v38  ;;  %v4915_v38 = vld [vmem:[#allocation8 + $0x70] ss:$8 sps:$4 sm:$0xff]  }
 0x232   :  { %3456 = vmatprep.subr.bf16.mxu0 %v4854_v39  ;;  %v4917_v39 = vld [vmem:[#allocation8 + $0x74] ss:$8 sps:$4 sm:$0xff]  }
 0x233   :  { %3496 = vmatpush2.bf16.msra.mxu1 %v4897_v48  ;;  %v4932_v48 = vld [vmem:[#allocation8 + $0x24] ss:$8 sps:$4 sm:$0xff]  }
 0x234   :  { %3497 = vmatprep.subr.bf16.mxu1 %v4902_v50  ;;  %v4930_v50 = vld [vmem:[#allocation8 + $0x20] ss:$8 sps:$4 sm:$0xff]  }
 0x235   :  { %3457 = vmatpush2.bf16.msra.mxu0 %v4852_v42  ;;  %v4923_v42 = vld [vmem:[#allocation8 + $0x54] ss:$8 sps:$4 sm:$0xff]  }
 0x236   :  { %3458 = vmatprep.subr.bf16.mxu0 %v4857_v43  ;;  %v4921_v43 = vld [vmem:[#allocation8 + $0x50] ss:$8 sps:$4 sm:$0xff]  }
 0x237   :  { %3498 = vmatpush2.bf16.msra.mxu1 %v4900_v53  ;;  %v4938_v53 = vld [vmem:[#allocation8 + $0x4] ss:$8 sps:$4 sm:$0xff]  }
 0x238   :  { %3499 = vmatprep.subr.bf16.mxu1 %v4905_v55  ;;  %v4936_v55 = vld [vmem:[#allocation8] ss:$8 sps:$4 sm:$0xff]  }
 0x239   :  { %3459 = vmatpush2.bf16.msra.mxu0 %v4855_v46  ;;  %v4929_v46 = vld [vmem:[#allocation8 + $0x34] ss:$8 sps:$4 sm:$0xff]  }
 0x23a   :  { %3460 = vmatprep.subr.bf16.mxu0 %v4860_v49  ;;  %v4927_v49 = vld [vmem:[#allocation8 + $0x30] ss:$8 sps:$4 sm:$0xff]  }
 0x23b   :  { %3500 = vmatpush2.bf16.msra.mxu1 %v4903_v62  ;;  %v4944_v62 = vld [vmem:[#allocation8 + $0xe4] ss:$8 sps:$4 sm:$0xff]  }
 0x23c   :  { %3501 = vmatprep.subr.bf16.mxu1 %v4908_v7  ;;  %v4953_v7 = vld [vmem:[#allocation8 + $0xb4] ss:$8 sps:$4 sm:$0xff]  }
 0x23d   :  { %3461 = vmatpush2.bf16.msra.mxu0 %v4858_v52  ;;  %v4935_v52 = vld [vmem:[#allocation8 + $0x14] ss:$8 sps:$4 sm:$0xff]  }
 0x23e   :  { %3462 = vmatprep.subr.bf16.mxu0 %v4863_v4  ;;  %v4933_v4 = vld [vmem:[#allocation8 + $0x10] ss:$8 sps:$4 sm:$0xff]  }
 0x23f   :  { %3502 = vmatpush2.bf16.msra.mxu1 %v4906_v9 }
 0x240   :  { %3503 = vmatprep.subr.bf16.mxu1 %v4911_v15 }
 0x241   :  { %3463 = vmatpush2.bf16.msra.mxu0 %v4861_v59  ;;  %v4941_v59 = vld [vmem:[#allocation8 + $0xf4] ss:$8 sps:$4 sm:$0xff]  }
 0x242   :  { %3464 = vmatprep.subr.bf16.mxu0 %v4866_v61  ;;  %v4939_v61 = vld [vmem:[#allocation8 + $0xf0] ss:$8 sps:$4 sm:$0xff]  }
 0x243   :  { %3504 = vmatpush2.bf16.msra.mxu1 %v4909_v22  ;;  %v4954_v22 = vld [vmem:[#allocation8 + $0xa0] ss:$8 sps:$4 sm:$0xff]  }
 0x244   :  { %3505 = vmatprep.subr.bf16.mxu1 %v4914_v19 }
 0x245   :  { %3465 = vmatpush2.bf16.msra.mxu0 %v4864_v33  ;;  %v4947_v33 = vld [vmem:[#allocation8 + $0xd4] ss:$8 sps:$4 sm:$0xff]  }
 0x246   :  { %3728 = vmatprep.subr.bf16.mxu0 %v4917_v39 }
 0x247   :  { %3506 = vmatpush2.bf16.msra.mxu1 %v4912_v18 }
 0x248   :  { %v2810_v2 = vpop.f32.mrf.mxu0 }
 0x249   :  { %v2811_v5 = vadd.f32 %v2810_v2, %v2770_v36  ;;  %v2851_v6 = vpop.f32.mrf.mxu1  ;;  %v4950_v2 = vld [vmem:[#allocation8 + $0xc4] ss:$8 sps:$4 sm:$0xff]  }
 0x24a   :  { %v2812_v8 = vpop.f32.mrf.mxu0 }
 0x24b   :  { %v2852_v10 = vadd.f32 %v2851_v6, %v2811_v5  ;;  %v2813_v11 = vadd.f32 %v2812_v8, %v2772_v3  ;;  %v2853_v12 = vpop.f32.mrf.mxu1  ;;  %v4948_v5 = vld [vmem:[#allocation8 + $0xc0] ss:$8 sps:$4 sm:$0xff]  }
 0x24c   :  { %v2814_v13 = vpop.f32.mrf.mxu0 }
 0x24d   :  { %vm3022_vm8 = vcmp.ge.f32.partialorder %v2852_v10, 0.0  ;;  %v3026_v56 = vmul.f32 0.01, %v2852_v10  ;;  %v2854_v54 = vadd.f32 %v2853_v12, %v2813_v11  ;;  %v2855_v14 = vpop.f32.mrf.mxu1  ;;  %v4956_v13 = vld [vmem:[#allocation8 + $0xa4] ss:$8 sps:$4 sm:$0xff]  }
 0x24e   :  { %v2815_v51 = vpop.f32.mrf.mxu0 }
 0x24f   :  { %vm3023_vm9 = vcmp.ge.f32.partialorder %v2854_v54, 0.0  ;;  %v3027_v57 = vmul.f32 0.01, %v2854_v54  ;;  %v2856_v16 = vpop.f32.mrf.mxu1  ;;  %v3030_v17 = vsel %vm3022_vm8, %v2852_v10, %v3026_v56 }
 0x250   :  { %v3034_v28 = vpack.c.bf16 %v3030_v17, %v3030_v17 }
 0x251   :  { %v3031_v20 = vsel %vm3023_vm9, %v2854_v54, %v3027_v57 }
 0x252   :  { %v3035_v27 = vpack.c.bf16 %v3031_v20, %v3031_v20 }
 0x254   :  { %3466 = vmatprep.mubr.bf16.mxu0 %v3035_v27 }
 0x255   :  { %3467 = vmatmul.mubr.bf16.vlgmr.msra.gmra.mxu0 %v3034_v28 }
 0x256   :  { %3729 = vmatpush1.bf16.msra.mxu0 %v4915_v38 }
 0x257   :  { %3730 = vmatprep.subr.bf16.mxu0 %v4920_v40 }
 0x25a   :  { %3731 = vmatpush1.bf16.msra.mxu0 %v4918_v41 }
 0x25b   :  { %3732 = vmatprep.subr.bf16.mxu0 %v4923_v42 }
 0x25e   :  { %3733 = vmatpush1.bf16.msra.mxu0 %v4921_v43 }
 0x25f   :  { %3734 = vmatprep.subr.bf16.mxu0 %v4926_v44 }
 0x262   :  { %3735 = vmatpush1.bf16.msra.mxu0 %v4924_v45 }
 0x263   :  { %3736 = vmatprep.subr.bf16.mxu0 %v4929_v46 }
 0x266   :  { %3737 = vmatpush1.bf16.msra.mxu0 %v4927_v49 }
 0x267   :  { %3738 = vmatprep.subr.bf16.mxu0 %v4932_v48 }
 0x26a   :  { %3739 = vmatpush1.bf16.msra.mxu0 %v4930_v50 }
 0x26b   :  { %3740 = vmatprep.subr.bf16.mxu0 %v4935_v52 }
 0x26e   :  { %3741 = vmatpush1.bf16.msra.mxu0 %v4933_v4 }
 0x26f   :  { %3742 = vmatprep.subr.bf16.mxu0 %v4938_v53 }
 0x272   :  { %3743 = vmatpush1.bf16.msra.mxu0 %v4936_v55  ;;  %v3556_v55 = vld [vmem:[%s5316_s8] sm:$0x3] }
 0x273   :  { %3744 = vmatprep.subr.bf16.mxu0 %v4941_v59  ;;  %v3561_v59 = vrot.slane %v3556_v55, %v5185_v21 }
 0x276   :  { %3745 = vmatpush2.bf16.msra.mxu0 %v4939_v61  ;;  %v3565_v61 = vrot.slane %v3556_v55, %v5194_v25 }
 0x277   :  { %3746 = vmatprep.subr.bf16.mxu0 %v4944_v62  ;;  %v3775_v62 = vld [vmem:[%s5317_s9] sm:$0x3] }
 0x27a   :  { %3747 = vmatpush2.bf16.msra.mxu0 %v4942_v34 }
 0x27b   :  { %3748 = vmatprep.subr.bf16.mxu0 %v4947_v33 }
 0x27e   :  { %3749 = vmatpush2.bf16.msra.mxu0 %v4945_v1 }
 0x27f   :  { %3750 = vmatprep.subr.bf16.mxu0 %v4950_v2 }
 0x282   :  { %3751 = vmatpush2.bf16.msra.mxu0 %v4948_v5 }
 0x283   :  { %3752 = vmatprep.subr.bf16.mxu0 %v4953_v7 }
 0x286   :  { %3753 = vmatpush2.bf16.msra.mxu0 %v4951_v47 }
 0x287   :  { %3754 = vmatprep.subr.bf16.mxu0 %v4956_v13 }
 0x288   :  { %v2892_v29 = vpop.f32.mrf.mxu0 }
 0x289   :  { %v2933_v30 = vpop.f32.mrf.mxu1  ;;  %v2893_v36 = vadd.f32 %v2892_v29, %v1405_v63  ;;  %v4959_v29 = vld [vmem:[#allocation8 + $0x94] ss:$8 sps:$4 sm:$0xff]  }
 0x28a   :  { %v2894_v31 = vpop.f32.mrf.mxu0  ;;  %3755 = vmatpush2.bf16.msra.mxu0 %v4954_v22 }
 0x28b   :  { %v2935_v32 = vpop.f32.mrf.mxu1  ;;  %v2895_v3 = vadd.f32 %v2894_v31, %v1409_v0  ;;  %v2934_v6 = vadd.f32 %v2933_v30, %v2893_v36  ;;  %v4957_v31 = vld [vmem:[#allocation8 + $0x90] ss:$8 sps:$4 sm:$0xff]   ;;  %3756 = vmatprep.subr.bf16.mxu0 %v4959_v29  ;;  %v3780_v0 = vrot.slane %v3775_v62, %v5185_v21 }
 0x28c   :  { %v2896_v60 = vpop.f32.mrf.mxu0 }
 0x28d   :  { %v2937_v23 = vpop.f32.mrf.mxu1  ;;  %v2936_v9 = vadd.f32 %v2935_v32, %v2895_v3  ;;  %v4960_v60 = vld [vmem:[#allocation8 + $0x80] ss:$8 sps:$4 sm:$0xff]   ;;  %v3784_v3 = vrot.slane %v3775_v62, %v5194_v25 }
 0x28e   :  { %v2897_v35 = vpop.f32.mrf.mxu0  ;;  %3757 = vmatpush2.bf16.msra.mxu0 %v4957_v31  ;;  %v4962_v23 = vld [vmem:[#allocation8 + $0x84] ss:$8 sps:$4 sm:$0xff]  }
 0x28f   :  { %v2938_v37 = vpop.f32.mrf.mxu1  ;;  %3758 = vmatprep.subr.bf16.mxu0 %v4962_v23  ;;  %v3102_v35 = vld [vmem:[%s5314_s6] sm:$0x3] }
 0x290   :  { %v3107_v37 = vrot.slane %v3102_v35, %v5185_v21  ;;  %v3111_v38 = vrot.slane %v3102_v35, %v5194_v25  ;;  %v4405_v21 = vld [vmem:[#allocation2] ss:$0 sm:$0xff] }
 0x292   :  { %3759 = vmatpush2.bf16.msra.mxu0 %v4960_v60 }
 0x2c8   :  { %v2974_v8 = vpop.f32.mrf.mxu0 }
 0x2c9   :  { %v2975_v24 = vadd.f32 %v2974_v8, %v2934_v6  ;;  %v3015_v10 = vpop.f32.mrf.mxu1 }
 0x2ca   :  { %v2976_v11 = vpop.f32.mrf.mxu0 }
 0x2cb   :  { %v3016_v12 = vadd.f32 %v3015_v10, %v2975_v24  ;;  %v2977_v26 = vadd.f32 %v2976_v11, %v2936_v9  ;;  %v3017_v58 = vpop.f32.mrf.mxu1 }
 0x2cc   :  { %v2978_v56 = vpop.f32.mrf.mxu0 }
 0x2cd   :  { %vm3024_vm10 = vcmp.ge.f32.partialorder %v3016_v12, 0.0  ;;  %v3028_v54 = vmul.f32 0.01, %v3016_v12  ;;  %v3018_v14 = vadd.f32 %v3017_v58, %v2977_v26  ;;  %v3019_v15 = vpop.f32.mrf.mxu1  ;;  %v4406_v56 = vld [vmem:[%s5319_s11] ss:$0 sm:$0xff] }
 0x2ce   :  { %v2979_v51 = vpop.f32.mrf.mxu0 }
 0x2cf   :  { %vm3025_vm11 = vcmp.ge.f32.partialorder %v3018_v14, 0.0  ;;  %v3029_v57 = vmul.f32 0.01, %v3018_v14  ;;  %v3020_v16 = vpop.f32.mrf.mxu1  ;;  %v3032_v17 = vsel %vm3024_vm10, %v3016_v12, %v3028_v54  ;;  %v5064_v12 = vmov 0  }
 0x2d0   :  { %v3036_v20 = vpack.c.bf16 %v3032_v17, %v3032_v17  ;;  %4434 = vset.pattern.permute.xlu0 %v5064_v12  ;;  %v5065_v16 = vmov 0.0   ;;  %v3834_v17 = vld [vmem:[%s5321_s13] sm:$0xff] }
 0x2d1   :  { %v3033_v18 = vsel %vm3025_vm11, %v3018_v14, %v3029_v57  ;;  %v4407_v14 = vld [vmem:[%s5320_s12] ss:$0 sm:$0xff]  ;;  %v3835_v57 = vld [vmem:[%s5321_s13 + $0x8] sm:$0xf]  ;;  %4413 = vmatprep.subr.mxu1 %v5065_v16 }
 0x2d2   :  { %v3037_v19 = vpack.c.bf16 %v3033_v18, %v3033_v18 }
 0x2d4   :  { %3507 = vmatprep.mubr.bf16.mxu1 %v3037_v19 }
 0x2d5   :  { %3508 = vmatmul.mubr.bf16.vlgmr.msra.gmra.mxu1 %v3036_v20 }
 0x2d6   :  { %4417 = vmatprep.mubr.msk.f32.mxu1 %vm5066_vm4, %v5065_v16  ;;  %4414 = vmatpush3.msk.msra.mxu1 %vm3840_vm3, %v3835_v57 }
 0x2d7   :  { %4415 = vmatprep.subr.mxu1 %v5065_v16 }
 0x2d8   :  { %4416 = vmatpush3.msra.mxu1 %v3834_v17 }
 0x315   :  { %v3468_v27 = vpop.f32.mrf.mxu0 }
 0x316   :  { %v3469_v39 = vadd.f32 %v3468_v27, %v3107_v37 }
 0x317   :  { %v3470_v28 = vpop.f32.mrf.mxu0 }
 0x318   :  { %v3471_v41 = vadd.f32 %v3470_v28, %v3111_v38 }
 0x319   :  { %v3472_v30 = vpop.f32.mrf.mxu0 }
 0x31b   :  { %v3473_v32 = vpop.f32.mrf.mxu0 }
 0x395   :  { %v3509_v40 = vpop.f32.mrf.mxu1 }
 0x396   :  { %v3510_v42 = vadd.f32 %v3509_v40, %v3469_v39 }
 0x397   :  { %v3511_v43 = vpop.f32.mrf.mxu1 }
 0x398   :  { %vm3516_vm12 = vcmp.ge.f32.partialorder %v3510_v42, 0.0  ;;  %v3518_v44 = vmul.f32 0.01, %v3510_v42  ;;  %v3512_v45 = vadd.f32 %v3511_v43, %v3471_v41 }
 0x399   :  { %v3513_v46 = vpop.f32.mrf.mxu1 }
 0x39a   :  { %vm3517_vm13 = vcmp.ge.f32.partialorder %v3512_v45, 0.0  ;;  %v3519_v49 = vmul.f32 0.01, %v3512_v45  ;;  %v3520_v48 = vsel %vm3516_vm12, %v3510_v42, %v3518_v44 }
 0x39b   :  { %v3514_v50 = vpop.f32.mrf.mxu1  ;;  %v3522_v53 = vpack.c.bf16 %v3520_v48, %v3520_v48 }
 0x39c   :  { %v3521_v52 = vsel %vm3517_vm13, %v3512_v45, %v3519_v49 }
 0x39d   :  { %v3523_v4 = vpack.c.bf16 %v3521_v52, %v3521_v52 }
 0x39f   :  { %3760 = vmatprep.mubr.bf16.mxu0 %v3523_v4 }
 0x3a0   :  { %3761 = vmatmul.mubr.bf16.vlgmr.msra.gmra.mxu0 %v3522_v53 }
 0x460   :  { %v3762_v34 = vpop.f32.mrf.mxu0 }
 0x461   :  { %v3763_v63 = vadd.f32 %v3762_v34, %v3561_v59 }
 0x462   :  { %v3764_v33 = vpop.f32.mrf.mxu0 }
 0x463   :  { %vm3769_vm14 = vcmp.ge.f32.partialorder %v3763_v63, 0.0  ;;  %v3771_v1 = vmul.f32 0.01, %v3763_v63  ;;  %v3765_v36 = vadd.f32 %v3764_v33, %v3565_v61 }
 0x464   :  { %v3766_v2 = vpop.f32.mrf.mxu0 }
 0x465   :  { %vm3770_vm15 = vcmp.ge.f32.partialorder %v3765_v36, 0.0  ;;  %v3772_v5 = vmul.f32 0.01, %v3765_v36  ;;  %v3773_v6 = vsel %vm3769_vm14, %v3763_v63, %v3771_v1 }
 0x466   :  { %v3767_v7 = vpop.f32.mrf.mxu0  ;;  %v3787_v8 = vmul.f32 %v3780_v0, %v3773_v6 }
 0x467   :  { %v3774_v9 = vsel %vm3770_vm15, %v3765_v36, %v3772_v5 }
 0x468   :  { %v3788_v24 = vmul.f32 %v3784_v3, %v3774_v9  ;;  %v3790_v10 = vsel %vm3789_vm0, %v3787_v8, 0.0 }
 0x46a   :  { %v3791_v11 = vsel %vm3789_vm0, %v3788_v24, 0.0 }
 0x46b   :  { %v3792_v47 = vadd.f32 %v3791_v11, %v3790_v10 }
 0x46d   :  { %3793 = vadd.xlane.f32.xlu0 %v3792_v47 }
 0x4f6   :  { %v3794_v26 = vpop.xlane.xlu0 %3793 }
 0x4f7   :  { %v3802_v58 = vadd.f32 %v4405_v21, %v3794_v26 }
 0x4f9   :  { %v3804_v13 = vmul.f32 0.01, %v3802_v58  ;;  %vm3803_vm1 = vcmp.ge.f32.partialorder %v3802_v58, 0.0 }
 0x4fb   :  { %v3805_v25 = vsel %vm3803_vm1, %v3802_v58, %v3804_v13 }
 0x4fc   :  { %3809 = vperm.xlu0 %4434, %v3805_v25  }
 0x577   :  { %v3810_v54 = vpop.permute.xlu0 %3809 }
 0x578   :  { %v3818_v15 = vmul.f32 %v4406_v56, %v3810_v54 }
 0x57a   :  { %v3826_v51 = vadd.f32 %v4407_v14, %v3818_v15 }
 0x57c   :  { %v3828_v22 = vsel %vm3827_vm2, %v3826_v51, -inf }
 0x57d   :  { %3829 = vmax.xlane.f32.xlu1 %v3828_v22 }
 0x606   :  { %v3830_v18 = vpop.xlane.xlu1 %3829 }
 0x607   :  { %v3831_v19 = vsub.f32 %v3826_v51, %v3830_v18 }
 0x609   :  { %v3832_v20 = vmul.f32 1.442695, %v3831_v19 }
 0x60b   :  { %4963 = vpow2.f32 %v3832_v20 }
 0x618   :  { %v4964_v27 = vpop.eup %4963 }
 0x619   :  { %4418 = vmatmul.mubr.msk.f32.vlgmr.msra.gmra.mxu1 %vm3836_vm5, %v4964_v27 }
 0x6d9   :  { %v3910_v28 = vpop.f32.mrf.mxu1 }
 0x6da   :  { %4965 = vrcp.f32 %v3910_v28 }
 0x6db   :  { %v4419_v29 = vpop.f32.mrf.mxu1 }
 0x6e7   :  { %v4966_v30 = vpop.eup %4965 }
 0x6e8   :  { %v3915_v31 = vmul.f32 %v4966_v30, %v4964_v27 }
 0x6ea   :  { %3916 = vst.msk [vmem:[%s5322_s14] sm:$0x3] %vm3827_vm2, %v3915_v31 }
 0x6eb   :  { %3921 = vsyncpa [#allocation4], 1 }
 0x6ec   :  { %3922 = vsyncpa [#allocation6], 1 }
 0x6ed   :  { %3923 = vsyncpa [#allocation9], 1 }

</bundles_post_ra>
